<compile_context>
chip_gen: v6e
topology: v6e:2x2x1
jax: 0.10.0
libtpu: 0.0.40
codegen_flags: <defaults>
</compile_context>

<pallas_src>
import functools

import jax
import jax.numpy as jnp
from jax import lax
from jax.experimental import pallas as pl
from jax.experimental.pallas import tpu as pltpu


def _round_up(x, m):
    return -(-x // m) * m


# ----------------------------------------------------------------------------
# Pallas kernel
# ----------------------------------------------------------------------------
def _semiconv_kernel(x_ref, w_ref, b_ref, msk_ref, o_ref, win_ref, *,
                     c_in, tile_ci, tile_co, M, N, H, W, HWp, ph0, pw0,
                     agg, weight, agg_id):
    """One (batch, co-tile, ci-block) grid step.

    x_ref   : VMEM (1, TILE_CI, HWp)             8 input channels, lane-dense spatial
    w_ref   : VMEM (1, 1, TILE_CO, TILE_CI, MN)  weights for this (co-tile, ci-block)
    b_ref   : VMEM (1, TILE_CO, 1)               bias for this co-tile
    msk_ref : VMEM (MN, HWp) int32               per-tap border-validity table
    o_ref   : VMEM (1, TILE_CO, HWp)             resident f32 output accumulator
    win_ref : VMEM (MN, TILE_CI, HWp) scratch    shifted + masked windows
    """
    MN = M * N
    fill = jnp.float32(agg_id)
    ci_t = pl.program_id(2)

    # First reduction step: seed the resident output block with the bias.
    @pl.when(ci_t == 0)
    def _():
        o_ref[0, :, :] = jnp.broadcast_to(b_ref[0], (tile_co, HWp))

    # ---- Build all MN shifted+masked windows once per (batch, ci-block). ----
    # Spatial taps = XLU lane rotations of the flat (TILE_CI, HWp) block; the
    # out-of-image (and spatial pad tail) positions are replaced by the
    # aggregation identity — identical to the reference's identity padding,
    # applied before `weight` (so weight(agg_id, w) matches the reference).
    x_blk = x_ref[0]                                        # (TILE_CI, HWp)
    for m in range(M):
        for n in range(N):
            tap = m * N + n
            dh, dw = m - ph0, n - pw0                       # static tap offsets
            sh = (-(dh * W + dw)) % HWp                     # flat roll amount
            win = x_blk if sh == 0 else pltpu.roll(x_blk, shift=sh, axis=1)
            valid = msk_ref[tap:tap + 1, :] != 0            # (1, HWp)
            win_ref[tap] = jnp.where(valid, win, fill)

    # Channel-validity column (only needed when C_in was padded up to TILE_CI):
    # padded channels must contribute 0 to the plain cross-channel sum.
    need_ci_mask = (c_in % tile_ci) != 0
    if need_ci_mask:
        ch = lax.broadcasted_iota(jnp.int32, (tile_ci, 1), 0) + ci_t * tile_ci
        ci_valid = ch < c_in                                # (TILE_CI, 1)

    # ---- co loop: every rolled/masked window is reused TILE_CO times. ----
    for co in range(tile_co):
        w_co = w_ref[0, 0, co]                              # (TILE_CI, MN)
        agg_acc = jnp.full((tile_ci, HWp), agg_id, jnp.float32)
        for tap in range(MN):
            win = win_ref[tap]                              # vld slot; no vreg pinning
            wv = w_co[:, tap:tap + 1]                       # (TILE_CI, 1) weight column
            agg_acc = agg(agg_acc, weight(win, wv))         # VPU, full vregs
        if need_ci_mask:
            agg_acc = jnp.where(ci_valid, agg_acc, 0.0)
        contrib = jnp.sum(agg_acc, axis=0, keepdims=True)   # 8-sublane XLU sum
        o_ref[0, co:co + 1, :] = o_ref[0, co:co + 1, :] + contrib


# ----------------------------------------------------------------------------
# Wrapper (layout plumbing + pallas_call)
# ----------------------------------------------------------------------------
def semi_conv2d(x, w, bias, semifield, *, max_tile_co=32):
    """x: [B, C_in, H, W], w: [C_out, C_in, M, N], bias: [C_out]."""
    aggregation, weighting, aggregation_id, _weighting_id = semifield
    B, C_in, H, W = x.shape
    C_out, _, M, N = w.shape
    HW, MN = H * W, M * N

    # Same padding rule as the PyTorch module (parity keyed off M).
    if M % 2 != 0:
        ph0, ph1, pw0, pw1 = M // 2, M // 2, N // 2, N // 2
    else:
        ph0, ph1, pw0, pw1 = M // 2 - 1, M // 2, N // 2 - 1, N // 2
    assert ph0 + ph1 == M - 1 and pw0 + pw1 == N - 1, (
        "output spatial size must equal input size "
        "(same constraint as the PyTorch module's final .view)")

    TILE_CI = 8                                  # one sublane group per ci block
    C_in_p = _round_up(C_in, TILE_CI)
    n_ci = C_in_p // TILE_CI

    TILE_CO = min(max_tile_co, _round_up(C_out, 8))
    n_co = pl.cdiv(C_out, TILE_CO)
    C_out_p = n_co * TILE_CO

    HWp = _round_up(HW, 128)                     # lane-dense, unmasked stores

    # Lane-dense input (B, C_in_p, HWp); channel / spatial pads are neutralized
    # in-kernel (ci validity mask, per-tap mask table), so pad value is just 0.
    x_k = x.astype(jnp.float32).reshape(B, C_in, HW)
    if (C_in_p, HWp) != (C_in, HW):
        x_k = jnp.pad(x_k, ((0, 0), (0, C_in_p - C_in), (0, HWp - HW)))

    # Weights: (n_co, n_ci, TILE_CO, TILE_CI, MN) — TILE_CI lands on sublanes so
    # one (TILE_CI, 1) column broadcasts over the HWp lanes.
    w_f = jnp.pad(w.astype(jnp.float32),
                  ((0, C_out_p - C_out), (0, C_in_p - C_in), (0, 0), (0, 0)))
    w_k = (w_f.reshape(n_co, TILE_CO, n_ci, TILE_CI, MN)
              .transpose(0, 2, 1, 3, 4))
    b_k = jnp.pad(bias.astype(jnp.float32),
                  (0, C_out_p - C_out)).reshape(n_co, TILE_CO, 1)

    # Precomputed per-tap border-validity table (replaces in-kernel row/col
    # compares and the rc table; loaded per tap from VMEM, never pinned in vregs).
    r = jnp.arange(HW, dtype=jnp.int32) // W
    c = jnp.arange(HW, dtype=jnp.int32) % W
    taps = []
    for m in range(M):
        for n in range(N):
            dh, dw = m - ph0, n - pw0
            v = jnp.ones((HW,), jnp.bool_)
            if dh > 0:
                v = v & (r < H - dh)
            if dh < 0:
                v = v & (r >= -dh)
            if dw > 0:
                v = v & (c < W - dw)
            if dw < 0:
                v = v & (c >= -dw)
            taps.append(v)
    msk = jnp.stack(taps, axis=0).astype(jnp.int32)         # (MN, HW)
    if HWp != HW:
        msk = jnp.pad(msk, ((0, 0), (0, HWp - HW)))          # pad tail -> invalid

    kernel = functools.partial(
        _semiconv_kernel,
        c_in=C_in, tile_ci=TILE_CI, tile_co=TILE_CO, M=M, N=N, H=H, W=W,
        HWp=HWp, ph0=ph0, pw0=pw0,
        agg=aggregation, weight=weighting, agg_id=aggregation_id)

    # Generation-aware VMEM budget: never request the entire v7x 64 MiB.
    try:
        cap = pltpu.get_tpu_info().vmem_capacity_bytes
        vmem_limit = min(64 * 1024 * 1024, (cap * 3) // 4)
    except Exception:  # older jax / no query available
        vmem_limit = 48 * 1024 * 1024

    flops = 2 * B * C_out_p * C_in_p * MN * HWp              # 1 weight + 1 agg / tap
    bytes_accessed = 4 * (B * n_co * C_in_p * HWp            # x (re-read per co tile)
                          + B * n_co * n_ci * (TILE_CO * TILE_CI * MN + TILE_CO)
                          + MN * HWp                         # mask table
                          + B * C_out_p * HWp)               # output

    out_flat = pl.pallas_call(
        kernel,
        out_shape=jax.ShapeDtypeStruct((B, C_out_p, HWp), jnp.float32),
        grid=(B, n_co, n_ci),                                # reduction axis last
        in_specs=[
            pl.BlockSpec((1, TILE_CI, HWp), lambda b, ct, ci: (b, ci, 0)),
            pl.BlockSpec((1, 1, TILE_CO, TILE_CI, MN),
                         lambda b, ct, ci: (ct, ci, 0, 0, 0)),
            pl.BlockSpec((1, TILE_CO, 1), lambda b, ct, ci: (ct, 0, 0)),
            pl.BlockSpec((MN, HWp), lambda b, ct, ci: (0, 0)),
        ],
        out_specs=pl.BlockSpec((1, TILE_CO, HWp), lambda b, ct, ci: (b, ct, 0)),
        scratch_shapes=[pltpu.VMEM((MN, TILE_CI, HWp), jnp.float32)],
        compiler_params=pltpu.CompilerParams(
            dimension_semantics=("parallel", "parallel", "arbitrary"),
            vmem_limit_bytes=vmem_limit),
        cost_estimate=pl.CostEstimate(
            flops=flops, transcendentals=0, bytes_accessed=bytes_accessed),
    )(x_k, w_k, b_k, msk)

    return out_flat[:, :C_out, :HW].reshape(B, C_out, H, W)


# ----------------------------------------------------------------------------
# Pure-JAX reference (mirrors the PyTorch _semi_conv semantics)
# ----------------------------------------------------------------------------
def semi_conv2d_ref(x, w, bias, semifield):
    aggregation, weighting, aggregation_id, _ = semifield
    B, C_in, H, W = x.shape
    C_out, _, M, N = w.shape
    if M % 2 != 0:
        pad_h, pad_w = (M // 2, M // 2), (N // 2, N // 2)
    else:
        pad_h, pad_w = (M // 2 - 1, M // 2), (N // 2 - 1, N // 2)
    xp = jnp.pad(x.astype(jnp.float32), ((0, 0), (0, 0), pad_h, pad_w),
                 constant_values=aggregation_id)
    outs = []
    for co in range(C_out):
        total = jnp.full((B, H, W), bias[co], jnp.float32)
        for ci in range(C_in):
            ch = jnp.full((B, H, W), aggregation_id, jnp.float32)
            for m in range(M):
                for n in range(N):
                    ch = aggregation(ch, weighting(xp[:, ci, m:m + H, n:n + W],
                                                   w[co, ci, m, n]))
            total = total + ch
        outs.append(total)
    return jnp.stack(outs, axis=1)


# ----------------------------------------------------------------------------
if __name__ == "__main__":
    # Tropical (max, +) semifield: aggregation=max, weighting=add,
    # aggregation identity = -inf, weighting identity = 0.
    SEMIFIELD = (jnp.maximum, lambda a, b: a + b, -jnp.inf, 0.0)

    B, C_in, C_out, H, W, KS = 2, 4, 4, 16, 16, 3

    key = jax.random.PRNGKey(0)
    kx, kw, kb = jax.random.split(key, 3)
    x = jax.random.normal(kx, (B, C_in, H, W), dtype=jnp.float32)
    fan_in = C_in * KS * KS
    bound = 1.0 / (fan_in ** 0.5)
    w = jax.random.uniform(kw, (C_out, C_in, KS, KS), jnp.float32, -bound, bound)
    bias = jax.random.uniform(kb, (C_out,), jnp.float32, -bound, bound)

    out = semi_conv2d(x, w, bias, SEMIFIELD)
    out = jax.block_until_ready(out)

    ref = semi_conv2d_ref(x, w, bias, SEMIFIELD)
    assert out.shape == (B, C_out, H, W)
    assert jnp.allclose(out, ref, atol=1e-5, rtol=1e-5), "mismatch vs reference"

    print("KERNEL_OK")
</pallas_src>

<mosaic_0001>
module attributes {stable_mosaic.version = 11 : i64} {
  func.func @_semiconv_kernel(%arg0: i32, %arg1: i32, %arg2: i32, %arg3: memref<1x8x256xf32, #tpu.memory_space<vmem>>, %arg4: memref<1x1x8x8x9xf32, #tpu.memory_space<vmem>>, %arg5: memref<1x8x1xf32, #tpu.memory_space<vmem>>, %arg6: memref<9x256xi32, #tpu.memory_space<vmem>>, %arg7: memref<1x8x256xf32, #tpu.memory_space<vmem>>, %arg8: memref<9x8x256xf32, #tpu.memory_space<vmem>>) attributes {dimension_semantics = [#tpu.dimension_semantics<parallel>, #tpu.dimension_semantics<parallel>, #tpu.dimension_semantics<arbitrary>], iteration_bounds = array<i64: 2, 1, 1>, scalar_prefetch = 0 : i64, scratch_operands = 1 : i64, tpu.core_type = #tpu.core_type<tc>, window_params = [{transform_indices = @transform_0, window_bounds = array<i64: 1, 8, 256>}, {transform_indices = @transform_1, window_bounds = array<i64: 1, 1, 8, 8, 9>}, {transform_indices = @transform_2, window_bounds = array<i64: 1, 8, 1>}, {pipeline_mode = #tpu.pipeline_mode<synchronous>, transform_indices = @transform_3, window_bounds = array<i64: 9, 256>}, {transform_indices = @transform_4, window_bounds = array<i64: 1, 8, 256>}]} {
    %c0_i32 = arith.constant 0 : i32
    %0 = arith.cmpi eq, %arg2, %c0_i32 : i32
    %1 = arith.extui %0 : i1 to i32
    %c0_i32_0 = arith.constant 0 : i32
    %2 = arith.cmpi ne, %1, %c0_i32_0 : i32
    scf.if %2 {
      %c0_385 = arith.constant 0 : index
      %c0_386 = arith.constant 0 : index
      %c0_387 = arith.constant 0 : index
      %661 = vector.load %arg5[%c0_385, %c0_386, %c0_387] : memref<1x8x1xf32, #tpu.memory_space<vmem>>, vector<1x8x1xf32>
      %662 = vector.shape_cast %661 : vector<1x8x1xf32> to vector<8x1xf32>
      %663 = vector.shape_cast %662 : vector<8x1xf32> to vector<8x1xf32>
      %664 = vector.broadcast %663 : vector<8x1xf32> to vector<8x256xf32>
      %c0_388 = arith.constant 0 : index
      %c0_389 = arith.constant 0 : index
      %c0_390 = arith.constant 0 : index
      %665 = vector.load %arg7[%c0_388, %c0_389, %c0_390] : memref<1x8x256xf32, #tpu.memory_space<vmem>>, vector<1x8x256xf32>
      %666 = vector.shape_cast %665 : vector<1x8x256xf32> to vector<8x256xf32>
      %667 = vector.shape_cast %664 : vector<8x256xf32> to vector<1x8x256xf32>
      tpu.vector_store %arg7[%c0_388, %c0_389, %c0_390], %667 {strides = array<i32>} : memref<1x8x256xf32, #tpu.memory_space<vmem>>, vector<1x8x256xf32>,
    } else {
    }
    %c0 = arith.constant 0 : index
    %c0_1 = arith.constant 0 : index
    %c0_2 = arith.constant 0 : index
    %3 = vector.load %arg3[%c0, %c0_1, %c0_2] : memref<1x8x256xf32, #tpu.memory_space<vmem>>, vector<1x8x256xf32>
    %4 = vector.shape_cast %3 : vector<1x8x256xf32> to vector<8x256xf32>
    %c17_i32 = arith.constant 17 : i32
    %5 = tpu.dynamic_rotate %4 by %c17_i32 dim 1 : vector<8x256xf32>, i32 -> vector<8x256xf32>
    %c0_3 = arith.constant 0 : index
    %c0_4 = arith.constant 0 : index
    %6 = vector.load %arg6[%c0_3, %c0_4] : memref<9x256xi32, #tpu.memory_space<vmem>>, vector<1x256xi32>
    %c0_i32_5 = arith.constant 0 : i32
    %7 = vector.broadcast %c0_i32_5 : i32 to vector<1x256xi32>
    %8 = arith.cmpi ne, %6, %7 : vector<1x256xi32>
    %cst = arith.constant 0xFF800000 : f32
    %9 = vector.shape_cast %8 : vector<1x256xi1> to vector<1x256xi1>
    %10 = vector.broadcast %9 : vector<1x256xi1> to vector<8x256xi1>
    %11 = vector.broadcast %cst : f32 to vector<8x256xf32>
    %12 = arith.select %10, %5, %11 : vector<8x256xi1>, vector<8x256xf32>
    %c0_6 = arith.constant 0 : index
    %c0_7 = arith.constant 0 : index
    %c0_8 = arith.constant 0 : index
    %13 = vector.load %arg8[%c0_6, %c0_7, %c0_8] : memref<9x8x256xf32, #tpu.memory_space<vmem>>, vector<1x8x256xf32>
    %14 = vector.shape_cast %13 : vector<1x8x256xf32> to vector<8x256xf32>
    %15 = vector.shape_cast %12 : vector<8x256xf32> to vector<1x8x256xf32>
    tpu.vector_store %arg8[%c0_6, %c0_7, %c0_8], %15 {strides = array<i32>} : memref<9x8x256xf32, #tpu.memory_space<vmem>>, vector<1x8x256xf32>,
    %c16_i32 = arith.constant 16 : i32
    %16 = tpu.dynamic_rotate %4 by %c16_i32 dim 1 : vector<8x256xf32>, i32 -> vector<8x256xf32>
    %c1 = arith.constant 1 : index
    %c0_9 = arith.constant 0 : index
    %17 = vector.load %arg6[%c1, %c0_9] : memref<9x256xi32, #tpu.memory_space<vmem>>, vector<1x256xi32>
    %c0_i32_10 = arith.constant 0 : i32
    %18 = vector.broadcast %c0_i32_10 : i32 to vector<1x256xi32>
    %19 = arith.cmpi ne, %17, %18 : vector<1x256xi32>
    %cst_11 = arith.constant 0xFF800000 : f32
    %20 = vector.shape_cast %19 : vector<1x256xi1> to vector<1x256xi1>
    %21 = vector.broadcast %20 : vector<1x256xi1> to vector<8x256xi1>
    %22 = vector.broadcast %cst_11 : f32 to vector<8x256xf32>
    %23 = arith.select %21, %16, %22 : vector<8x256xi1>, vector<8x256xf32>
    %c1_12 = arith.constant 1 : index
    %c0_13 = arith.constant 0 : index
    %c0_14 = arith.constant 0 : index
    %24 = vector.load %arg8[%c1_12, %c0_13, %c0_14] : memref<9x8x256xf32, #tpu.memory_space<vmem>>, vector<1x8x256xf32>
    %25 = vector.shape_cast %24 : vector<1x8x256xf32> to vector<8x256xf32>
    %26 = vector.shape_cast %23 : vector<8x256xf32> to vector<1x8x256xf32>
    tpu.vector_store %arg8[%c1_12, %c0_13, %c0_14], %26 {strides = array<i32>} : memref<9x8x256xf32, #tpu.memory_space<vmem>>, vector<1x8x256xf32>,
    %c15_i32 = arith.constant 15 : i32
    %27 = tpu.dynamic_rotate %4 by %c15_i32 dim 1 : vector<8x256xf32>, i32 -> vector<8x256xf32>
    %c2 = arith.constant 2 : index
    %c0_15 = arith.constant 0 : index
    %28 = vector.load %arg6[%c2, %c0_15] : memref<9x256xi32, #tpu.memory_space<vmem>>, vector<1x256xi32>
    %c0_i32_16 = arith.constant 0 : i32
    %29 = vector.broadcast %c0_i32_16 : i32 to vector<1x256xi32>
    %30 = arith.cmpi ne, %28, %29 : vector<1x256xi32>
    %cst_17 = arith.constant 0xFF800000 : f32
    %31 = vector.shape_cast %30 : vector<1x256xi1> to vector<1x256xi1>
    %32 = vector.broadcast %31 : vector<1x256xi1> to vector<8x256xi1>
    %33 = vector.broadcast %cst_17 : f32 to vector<8x256xf32>
    %34 = arith.select %32, %27, %33 : vector<8x256xi1>, vector<8x256xf32>
    %c2_18 = arith.constant 2 : index
    %c0_19 = arith.constant 0 : index
    %c0_20 = arith.constant 0 : index
    %35 = vector.load %arg8[%c2_18, %c0_19, %c0_20] : memref<9x8x256xf32, #tpu.memory_space<vmem>>, vector<1x8x256xf32>
    %36 = vector.shape_cast %35 : vector<1x8x256xf32> to vector<8x256xf32>
    %37 = vector.shape_cast %34 : vector<8x256xf32> to vector<1x8x256xf32>
    tpu.vector_store %arg8[%c2_18, %c0_19, %c0_20], %37 {strides = array<i32>} : memref<9x8x256xf32, #tpu.memory_space<vmem>>, vector<1x8x256xf32>,
    %c1_i32 = arith.constant 1 : i32
    %38 = tpu.dynamic_rotate %4 by %c1_i32 dim 1 : vector<8x256xf32>, i32 -> vector<8x256xf32>
    %c3 = arith.constant 3 : index
    %c0_21 = arith.constant 0 : index
    %39 = vector.load %arg6[%c3, %c0_21] : memref<9x256xi32, #tpu.memory_space<vmem>>, vector<1x256xi32>
    %c0_i32_22 = arith.constant 0 : i32
    %40 = vector.broadcast %c0_i32_22 : i32 to vector<1x256xi32>
    %41 = arith.cmpi ne, %39, %40 : vector<1x256xi32>
    %cst_23 = arith.constant 0xFF800000 : f32
    %42 = vector.shape_cast %41 : vector<1x256xi1> to vector<1x256xi1>
    %43 = vector.broadcast %42 : vector<1x256xi1> to vector<8x256xi1>
    %44 = vector.broadcast %cst_23 : f32 to vector<8x256xf32>
    %45 = arith.select %43, %38, %44 : vector<8x256xi1>, vector<8x256xf32>
    %c3_24 = arith.constant 3 : index
    %c0_25 = arith.constant 0 : index
    %c0_26 = arith.constant 0 : index
    %46 = vector.load %arg8[%c3_24, %c0_25, %c0_26] : memref<9x8x256xf32, #tpu.memory_space<vmem>>, vector<1x8x256xf32>
    %47 = vector.shape_cast %46 : vector<1x8x256xf32> to vector<8x256xf32>
    %48 = vector.shape_cast %45 : vector<8x256xf32> to vector<1x8x256xf32>
    tpu.vector_store %arg8[%c3_24, %c0_25, %c0_26], %48 {strides = array<i32>} : memref<9x8x256xf32, #tpu.memory_space<vmem>>, vector<1x8x256xf32>,
    %c4 = arith.constant 4 : index
    %c0_27 = arith.constant 0 : index
    %49 = vector.load %arg6[%c4, %c0_27] : memref<9x256xi32, #tpu.memory_space<vmem>>, vector<1x256xi32>
    %c0_i32_28 = arith.constant 0 : i32
    %50 = vector.broadcast %c0_i32_28 : i32 to vector<1x256xi32>
    %51 = arith.cmpi ne, %49, %50 : vector<1x256xi32>
    %cst_29 = arith.constant 0xFF800000 : f32
    %52 = vector.shape_cast %51 : vector<1x256xi1> to vector<1x256xi1>
    %53 = vector.broadcast %52 : vector<1x256xi1> to vector<8x256xi1>
    %54 = vector.broadcast %cst_29 : f32 to vector<8x256xf32>
    %55 = arith.select %53, %4, %54 : vector<8x256xi1>, vector<8x256xf32>
    %c4_30 = arith.constant 4 : index
    %c0_31 = arith.constant 0 : index
    %c0_32 = arith.constant 0 : index
    %56 = vector.load %arg8[%c4_30, %c0_31, %c0_32] : memref<9x8x256xf32, #tpu.memory_space<vmem>>, vector<1x8x256xf32>
    %57 = vector.shape_cast %56 : vector<1x8x256xf32> to vector<8x256xf32>
    %58 = vector.shape_cast %55 : vector<8x256xf32> to vector<1x8x256xf32>
    tpu.vector_store %arg8[%c4_30, %c0_31, %c0_32], %58 {strides = array<i32>} : memref<9x8x256xf32, #tpu.memory_space<vmem>>, vector<1x8x256xf32>,
    %c255_i32 = arith.constant 255 : i32
    %59 = tpu.dynamic_rotate %4 by %c255_i32 dim 1 : vector<8x256xf32>, i32 -> vector<8x256xf32>
    %c5 = arith.constant 5 : index
    %c0_33 = arith.constant 0 : index
    %60 = vector.load %arg6[%c5, %c0_33] : memref<9x256xi32, #tpu.memory_space<vmem>>, vector<1x256xi32>
    %c0_i32_34 = arith.constant 0 : i32
    %61 = vector.broadcast %c0_i32_34 : i32 to vector<1x256xi32>
    %62 = arith.cmpi ne, %60, %61 : vector<1x256xi32>
    %cst_35 = arith.constant 0xFF800000 : f32
    %63 = vector.shape_cast %62 : vector<1x256xi1> to vector<1x256xi1>
    %64 = vector.broadcast %63 : vector<1x256xi1> to vector<8x256xi1>
    %65 = vector.broadcast %cst_35 : f32 to vector<8x256xf32>
    %66 = arith.select %64, %59, %65 : vector<8x256xi1>, vector<8x256xf32>
    %c5_36 = arith.constant 5 : index
    %c0_37 = arith.constant 0 : index
    %c0_38 = arith.constant 0 : index
    %67 = vector.load %arg8[%c5_36, %c0_37, %c0_38] : memref<9x8x256xf32, #tpu.memory_space<vmem>>, vector<1x8x256xf32>
    %68 = vector.shape_cast %67 : vector<1x8x256xf32> to vector<8x256xf32>
    %69 = vector.shape_cast %66 : vector<8x256xf32> to vector<1x8x256xf32>
    tpu.vector_store %arg8[%c5_36, %c0_37, %c0_38], %69 {strides = array<i32>} : memref<9x8x256xf32, #tpu.memory_space<vmem>>, vector<1x8x256xf32>,
    %c241_i32 = arith.constant 241 : i32
    %70 = tpu.dynamic_rotate %4 by %c241_i32 dim 1 : vector<8x256xf32>, i32 -> vector<8x256xf32>
    %c6 = arith.constant 6 : index
    %c0_39 = arith.constant 0 : index
    %71 = vector.load %arg6[%c6, %c0_39] : memref<9x256xi32, #tpu.memory_space<vmem>>, vector<1x256xi32>
    %c0_i32_40 = arith.constant 0 : i32
    %72 = vector.broadcast %c0_i32_40 : i32 to vector<1x256xi32>
    %73 = arith.cmpi ne, %71, %72 : vector<1x256xi32>
    %cst_41 = arith.constant 0xFF800000 : f32
    %74 = vector.shape_cast %73 : vector<1x256xi1> to vector<1x256xi1>
    %75 = vector.broadcast %74 : vector<1x256xi1> to vector<8x256xi1>
    %76 = vector.broadcast %cst_41 : f32 to vector<8x256xf32>
    %77 = arith.select %75, %70, %76 : vector<8x256xi1>, vector<8x256xf32>
    %c6_42 = arith.constant 6 : index
    %c0_43 = arith.constant 0 : index
    %c0_44 = arith.constant 0 : index
    %78 = vector.load %arg8[%c6_42, %c0_43, %c0_44] : memref<9x8x256xf32, #tpu.memory_space<vmem>>, vector<1x8x256xf32>
    %79 = vector.shape_cast %78 : vector<1x8x256xf32> to vector<8x256xf32>
    %80 = vector.shape_cast %77 : vector<8x256xf32> to vector<1x8x256xf32>
    tpu.vector_store %arg8[%c6_42, %c0_43, %c0_44], %80 {strides = array<i32>} : memref<9x8x256xf32, #tpu.memory_space<vmem>>, vector<1x8x256xf32>,
    %c240_i32 = arith.constant 240 : i32
    %81 = tpu.dynamic_rotate %4 by %c240_i32 dim 1 : vector<8x256xf32>, i32 -> vector<8x256xf32>
    %c7 = arith.constant 7 : index
    %c0_45 = arith.constant 0 : index
    %82 = vector.load %arg6[%c7, %c0_45] : memref<9x256xi32, #tpu.memory_space<vmem>>, vector<1x256xi32>
    %c0_i32_46 = arith.constant 0 : i32
    %83 = vector.broadcast %c0_i32_46 : i32 to vector<1x256xi32>
    %84 = arith.cmpi ne, %82, %83 : vector<1x256xi32>
    %cst_47 = arith.constant 0xFF800000 : f32
    %85 = vector.shape_cast %84 : vector<1x256xi1> to vector<1x256xi1>
    %86 = vector.broadcast %85 : vector<1x256xi1> to vector<8x256xi1>
    %87 = vector.broadcast %cst_47 : f32 to vector<8x256xf32>
    %88 = arith.select %86, %81, %87 : vector<8x256xi1>, vector<8x256xf32>
    %c7_48 = arith.constant 7 : index
    %c0_49 = arith.constant 0 : index
    %c0_50 = arith.constant 0 : index
    %89 = vector.load %arg8[%c7_48, %c0_49, %c0_50] : memref<9x8x256xf32, #tpu.memory_space<vmem>>, vector<1x8x256xf32>
    %90 = vector.shape_cast %89 : vector<1x8x256xf32> to vector<8x256xf32>
    %91 = vector.shape_cast %88 : vector<8x256xf32> to vector<1x8x256xf32>
    tpu.vector_store %arg8[%c7_48, %c0_49, %c0_50], %91 {strides = array<i32>} : memref<9x8x256xf32, #tpu.memory_space<vmem>>, vector<1x8x256xf32>,
    %c239_i32 = arith.constant 239 : i32
    %92 = tpu.dynamic_rotate %4 by %c239_i32 dim 1 : vector<8x256xf32>, i32 -> vector<8x256xf32>
    %c8 = arith.constant 8 : index
    %c0_51 = arith.constant 0 : index
    %93 = vector.load %arg6[%c8, %c0_51] : memref<9x256xi32, #tpu.memory_space<vmem>>, vector<1x256xi32>
    %c0_i32_52 = arith.constant 0 : i32
    %94 = vector.broadcast %c0_i32_52 : i32 to vector<1x256xi32>
    %95 = arith.cmpi ne, %93, %94 : vector<1x256xi32>
    %cst_53 = arith.constant 0xFF800000 : f32
    %96 = vector.shape_cast %95 : vector<1x256xi1> to vector<1x256xi1>
    %97 = vector.broadcast %96 : vector<1x256xi1> to vector<8x256xi1>
    %98 = vector.broadcast %cst_53 : f32 to vector<8x256xf32>
    %99 = arith.select %97, %92, %98 : vector<8x256xi1>, vector<8x256xf32>
    %c8_54 = arith.constant 8 : index
    %c0_55 = arith.constant 0 : index
    %c0_56 = arith.constant 0 : index
    %100 = vector.load %arg8[%c8_54, %c0_55, %c0_56] : memref<9x8x256xf32, #tpu.memory_space<vmem>>, vector<1x8x256xf32>
    %101 = vector.shape_cast %100 : vector<1x8x256xf32> to vector<8x256xf32>
    %102 = vector.shape_cast %99 : vector<8x256xf32> to vector<1x8x256xf32>
    tpu.vector_store %arg8[%c8_54, %c0_55, %c0_56], %102 {strides = array<i32>} : memref<9x8x256xf32, #tpu.memory_space<vmem>>, vector<1x8x256xf32>,
    %103 = tpu.iota {dimensions = array<i32: 0>} : vector<8x1xi32>
    %c8_i32 = arith.constant 8 : i32
    %104 = arith.muli %arg2, %c8_i32 : i32
    %105 = vector.broadcast %104 : i32 to vector<8x1xi32>
    %106 = arith.addi %103, %105 : vector<8x1xi32>
    %c4_i32 = arith.constant 4 : i32
    %107 = vector.broadcast %c4_i32 : i32 to vector<8x1xi32>
    %108 = arith.cmpi slt, %106, %107 : vector<8x1xi32>
    %c0_57 = arith.constant 0 : index
    %c0_58 = arith.constant 0 : index
    %c0_59 = arith.constant 0 : index
    %c0_60 = arith.constant 0 : index
    %c0_61 = arith.constant 0 : index
    %109 = vector.load %arg4[%c0_57, %c0_58, %c0_59, %c0_60, %c0_61] : memref<1x1x8x8x9xf32, #tpu.memory_space<vmem>>, vector<1x1x1x8x9xf32>
    %110 = vector.shape_cast %109 : vector<1x1x1x8x9xf32> to vector<8x9xf32>
    %cst_62 = arith.constant 0xFF800000 : f32
    %111 = vector.broadcast %cst_62 : f32 to vector<8x256xf32>
    %c0_63 = arith.constant 0 : index
    %c0_64 = arith.constant 0 : index
    %c0_65 = arith.constant 0 : index
    %112 = vector.load %arg8[%c0_63, %c0_64, %c0_65] : memref<9x8x256xf32, #tpu.memory_space<vmem>>, vector<1x8x256xf32>
    %113 = vector.shape_cast %112 : vector<1x8x256xf32> to vector<8x256xf32>
    %114 = vector.extract_strided_slice %110 {offsets = [0, 0], sizes = [8, 1], strides = [1, 1]} : vector<8x9xf32> to vector<8x1xf32>
    %115 = vector.broadcast %114 : vector<8x1xf32> to vector<8x256xf32>
    %116 = arith.addf %113, %115 : vector<8x256xf32>
    %117 = arith.maximumf %111, %116 : vector<8x256xf32>
    %c1_66 = arith.constant 1 : index
    %c0_67 = arith.constant 0 : index
    %c0_68 = arith.constant 0 : index
    %118 = vector.load %arg8[%c1_66, %c0_67, %c0_68] : memref<9x8x256xf32, #tpu.memory_space<vmem>>, vector<1x8x256xf32>
    %119 = vector.shape_cast %118 : vector<1x8x256xf32> to vector<8x256xf32>
    %120 = vector.extract_strided_slice %110 {offsets = [0, 1], sizes = [8, 1], strides = [1, 1]} : vector<8x9xf32> to vector<8x1xf32>
    %121 = vector.broadcast %120 : vector<8x1xf32> to vector<8x256xf32>
    %122 = arith.addf %119, %121 : vector<8x256xf32>
    %123 = arith.maximumf %117, %122 : vector<8x256xf32>
    %c2_69 = arith.constant 2 : index
    %c0_70 = arith.constant 0 : index
    %c0_71 = arith.constant 0 : index
    %124 = vector.load %arg8[%c2_69, %c0_70, %c0_71] : memref<9x8x256xf32, #tpu.memory_space<vmem>>, vector<1x8x256xf32>
    %125 = vector.shape_cast %124 : vector<1x8x256xf32> to vector<8x256xf32>
    %126 = vector.extract_strided_slice %110 {offsets = [0, 2], sizes = [8, 1], strides = [1, 1]} : vector<8x9xf32> to vector<8x1xf32>
    %127 = vector.broadcast %126 : vector<8x1xf32> to vector<8x256xf32>
    %128 = arith.addf %125, %127 : vector<8x256xf32>
    %129 = arith.maximumf %123, %128 : vector<8x256xf32>
    %c3_72 = arith.constant 3 : index
    %c0_73 = arith.constant 0 : index
    %c0_74 = arith.constant 0 : index
    %130 = vector.load %arg8[%c3_72, %c0_73, %c0_74] : memref<9x8x256xf32, #tpu.memory_space<vmem>>, vector<1x8x256xf32>
    %131 = vector.shape_cast %130 : vector<1x8x256xf32> to vector<8x256xf32>
    %132 = vector.extract_strided_slice %110 {offsets = [0, 3], sizes = [8, 1], strides = [1, 1]} : vector<8x9xf32> to vector<8x1xf32>
    %133 = vector.broadcast %132 : vector<8x1xf32> to vector<8x256xf32>
    %134 = arith.addf %131, %133 : vector<8x256xf32>
    %135 = arith.maximumf %129, %134 : vector<8x256xf32>
    %c4_75 = arith.constant 4 : index
    %c0_76 = arith.constant 0 : index
    %c0_77 = arith.constant 0 : index
    %136 = vector.load %arg8[%c4_75, %c0_76, %c0_77] : memref<9x8x256xf32, #tpu.memory_space<vmem>>, vector<1x8x256xf32>
    %137 = vector.shape_cast %136 : vector<1x8x256xf32> to vector<8x256xf32>
    %138 = vector.extract_strided_slice %110 {offsets = [0, 4], sizes = [8, 1], strides = [1, 1]} : vector<8x9xf32> to vector<8x1xf32>
    %139 = vector.broadcast %138 : vector<8x1xf32> to vector<8x256xf32>
    %140 = arith.addf %137, %139 : vector<8x256xf32>
    %141 = arith.maximumf %135, %140 : vector<8x256xf32>
    %c5_78 = arith.constant 5 : index
    %c0_79 = arith.constant 0 : index
    %c0_80 = arith.constant 0 : index
    %142 = vector.load %arg8[%c5_78, %c0_79, %c0_80] : memref<9x8x256xf32, #tpu.memory_space<vmem>>, vector<1x8x256xf32>
    %143 = vector.shape_cast %142 : vector<1x8x256xf32> to vector<8x256xf32>
    %144 = vector.extract_strided_slice %110 {offsets = [0, 5], sizes = [8, 1], strides = [1, 1]} : vector<8x9xf32> to vector<8x1xf32>
    %145 = vector.broadcast %144 : vector<8x1xf32> to vector<8x256xf32>
    %146 = arith.addf %143, %145 : vector<8x256xf32>
    %147 = arith.maximumf %141, %146 : vector<8x256xf32>
    %c6_81 = arith.constant 6 : index
    %c0_82 = arith.constant 0 : index
    %c0_83 = arith.constant 0 : index
    %148 = vector.load %arg8[%c6_81, %c0_82, %c0_83] : memref<9x8x256xf32, #tpu.memory_space<vmem>>, vector<1x8x256xf32>
    %149 = vector.shape_cast %148 : vector<1x8x256xf32> to vector<8x256xf32>
    %150 = vector.extract_strided_slice %110 {offsets = [0, 6], sizes = [8, 1], strides = [1, 1]} : vector<8x9xf32> to vector<8x1xf32>
    %151 = vector.broadcast %150 : vector<8x1xf32> to vector<8x256xf32>
    %152 = arith.addf %149, %151 : vector<8x256xf32>
    %153 = arith.maximumf %147, %152 : vector<8x256xf32>
    %c7_84 = arith.constant 7 : index
    %c0_85 = arith.constant 0 : index
    %c0_86 = arith.constant 0 : index
    %154 = vector.load %arg8[%c7_84, %c0_85, %c0_86] : memref<9x8x256xf32, #tpu.memory_space<vmem>>, vector<1x8x256xf32>
    %155 = vector.shape_cast %154 : vector<1x8x256xf32> to vector<8x256xf32>
    %156 = vector.extract_strided_slice %110 {offsets = [0, 7], sizes = [8, 1], strides = [1, 1]} : vector<8x9xf32> to vector<8x1xf32>
    %157 = vector.broadcast %156 : vector<8x1xf32> to vector<8x256xf32>
    %158 = arith.addf %155, %157 : vector<8x256xf32>
    %159 = arith.maximumf %153, %158 : vector<8x256xf32>
    %c8_87 = arith.constant 8 : index
    %c0_88 = arith.constant 0 : index
    %c0_89 = arith.constant 0 : index
    %160 = vector.load %arg8[%c8_87, %c0_88, %c0_89] : memref<9x8x256xf32, #tpu.memory_space<vmem>>, vector<1x8x256xf32>
    %161 = vector.shape_cast %160 : vector<1x8x256xf32> to vector<8x256xf32>
    %162 = vector.extract_strided_slice %110 {offsets = [0, 8], sizes = [8, 1], strides = [1, 1]} : vector<8x9xf32> to vector<8x1xf32>
    %163 = vector.broadcast %162 : vector<8x1xf32> to vector<8x256xf32>
    %164 = arith.addf %161, %163 : vector<8x256xf32>
    %165 = arith.maximumf %159, %164 : vector<8x256xf32>
    %cst_90 = arith.constant 0.000000e+00 : f32
    %166 = vector.shape_cast %108 : vector<8x1xi1> to vector<8x1xi1>
    %167 = vector.broadcast %166 : vector<8x1xi1> to vector<8x256xi1>
    %168 = vector.broadcast %cst_90 : f32 to vector<8x256xf32>
    %169 = arith.select %167, %165, %168 : vector<8x256xi1>, vector<8x256xf32>
    %cst_91 = arith.constant dense<0.000000e+00> : vector<256xf32>
    %170 = vector.multi_reduction <add>, %169, %cst_91 [0] : vector<8x256xf32> to vector<256xf32>
    %171 = vector.shape_cast %170 : vector<256xf32> to vector<1x256xf32>
    %c0_92 = arith.constant 0 : index
    %c0_93 = arith.constant 0 : index
    %c0_94 = arith.constant 0 : index
    %172 = vector.load %arg7[%c0_92, %c0_93, %c0_94] : memref<1x8x256xf32, #tpu.memory_space<vmem>>, vector<1x1x256xf32>
    %173 = vector.shape_cast %172 : vector<1x1x256xf32> to vector<1x256xf32>
    %174 = arith.addf %173, %171 : vector<1x256xf32>
    %c0_95 = arith.constant 0 : index
    %c0_96 = arith.constant 0 : index
    %c0_97 = arith.constant 0 : index
    %175 = vector.load %arg7[%c0_95, %c0_96, %c0_97] : memref<1x8x256xf32, #tpu.memory_space<vmem>>, vector<1x1x256xf32>
    %176 = vector.shape_cast %175 : vector<1x1x256xf32> to vector<1x256xf32>
    %177 = vector.shape_cast %174 : vector<1x256xf32> to vector<1x1x256xf32>
    tpu.vector_store %arg7[%c0_95, %c0_96, %c0_97], %177 {strides = array<i32>} : memref<1x8x256xf32, #tpu.memory_space<vmem>>, vector<1x1x256xf32>,
    %c0_98 = arith.constant 0 : index
    %c0_99 = arith.constant 0 : index
    %c1_100 = arith.constant 1 : index
    %c0_101 = arith.constant 0 : index
    %c0_102 = arith.constant 0 : index
    %178 = vector.load %arg4[%c0_98, %c0_99, %c1_100, %c0_101, %c0_102] : memref<1x1x8x8x9xf32, #tpu.memory_space<vmem>>, vector<1x1x1x8x9xf32>
    %179 = vector.shape_cast %178 : vector<1x1x1x8x9xf32> to vector<8x9xf32>
    %cst_103 = arith.constant 0xFF800000 : f32
    %180 = vector.broadcast %cst_103 : f32 to vector<8x256xf32>
    %c0_104 = arith.constant 0 : index
    %c0_105 = arith.constant 0 : index
    %c0_106 = arith.constant 0 : index
    %181 = vector.load %arg8[%c0_104, %c0_105, %c0_106] : memref<9x8x256xf32, #tpu.memory_space<vmem>>, vector<1x8x256xf32>
    %182 = vector.shape_cast %181 : vector<1x8x256xf32> to vector<8x256xf32>
    %183 = vector.extract_strided_slice %179 {offsets = [0, 0], sizes = [8, 1], strides = [1, 1]} : vector<8x9xf32> to vector<8x1xf32>
    %184 = vector.broadcast %183 : vector<8x1xf32> to vector<8x256xf32>
    %185 = arith.addf %182, %184 : vector<8x256xf32>
    %186 = arith.maximumf %180, %185 : vector<8x256xf32>
    %c1_107 = arith.constant 1 : index
    %c0_108 = arith.constant 0 : index
    %c0_109 = arith.constant 0 : index
    %187 = vector.load %arg8[%c1_107, %c0_108, %c0_109] : memref<9x8x256xf32, #tpu.memory_space<vmem>>, vector<1x8x256xf32>
    %188 = vector.shape_cast %187 : vector<1x8x256xf32> to vector<8x256xf32>
    %189 = vector.extract_strided_slice %179 {offsets = [0, 1], sizes = [8, 1], strides = [1, 1]} : vector<8x9xf32> to vector<8x1xf32>
    %190 = vector.broadcast %189 : vector<8x1xf32> to vector<8x256xf32>
    %191 = arith.addf %188, %190 : vector<8x256xf32>
    %192 = arith.maximumf %186, %191 : vector<8x256xf32>
    %c2_110 = arith.constant 2 : index
    %c0_111 = arith.constant 0 : index
    %c0_112 = arith.constant 0 : index
    %193 = vector.load %arg8[%c2_110, %c0_111, %c0_112] : memref<9x8x256xf32, #tpu.memory_space<vmem>>, vector<1x8x256xf32>
    %194 = vector.shape_cast %193 : vector<1x8x256xf32> to vector<8x256xf32>
    %195 = vector.extract_strided_slice %179 {offsets = [0, 2], sizes = [8, 1], strides = [1, 1]} : vector<8x9xf32> to vector<8x1xf32>
    %196 = vector.broadcast %195 : vector<8x1xf32> to vector<8x256xf32>
    %197 = arith.addf %194, %196 : vector<8x256xf32>
    %198 = arith.maximumf %192, %197 : vector<8x256xf32>
    %c3_113 = arith.constant 3 : index
    %c0_114 = arith.constant 0 : index
    %c0_115 = arith.constant 0 : index
    %199 = vector.load %arg8[%c3_113, %c0_114, %c0_115] : memref<9x8x256xf32, #tpu.memory_space<vmem>>, vector<1x8x256xf32>
    %200 = vector.shape_cast %199 : vector<1x8x256xf32> to vector<8x256xf32>
    %201 = vector.extract_strided_slice %179 {offsets = [0, 3], sizes = [8, 1], strides = [1, 1]} : vector<8x9xf32> to vector<8x1xf32>
    %202 = vector.broadcast %201 : vector<8x1xf32> to vector<8x256xf32>
    %203 = arith.addf %200, %202 : vector<8x256xf32>
    %204 = arith.maximumf %198, %203 : vector<8x256xf32>
    %c4_116 = arith.constant 4 : index
    %c0_117 = arith.constant 0 : index
    %c0_118 = arith.constant 0 : index
    %205 = vector.load %arg8[%c4_116, %c0_117, %c0_118] : memref<9x8x256xf32, #tpu.memory_space<vmem>>, vector<1x8x256xf32>
    %206 = vector.shape_cast %205 : vector<1x8x256xf32> to vector<8x256xf32>
    %207 = vector.extract_strided_slice %179 {offsets = [0, 4], sizes = [8, 1], strides = [1, 1]} : vector<8x9xf32> to vector<8x1xf32>
    %208 = vector.broadcast %207 : vector<8x1xf32> to vector<8x256xf32>
    %209 = arith.addf %206, %208 : vector<8x256xf32>
    %210 = arith.maximumf %204, %209 : vector<8x256xf32>
    %c5_119 = arith.constant 5 : index
    %c0_120 = arith.constant 0 : index
    %c0_121 = arith.constant 0 : index
    %211 = vector.load %arg8[%c5_119, %c0_120, %c0_121] : memref<9x8x256xf32, #tpu.memory_space<vmem>>, vector<1x8x256xf32>
    %212 = vector.shape_cast %211 : vector<1x8x256xf32> to vector<8x256xf32>
    %213 = vector.extract_strided_slice %179 {offsets = [0, 5], sizes = [8, 1], strides = [1, 1]} : vector<8x9xf32> to vector<8x1xf32>
    %214 = vector.broadcast %213 : vector<8x1xf32> to vector<8x256xf32>
    %215 = arith.addf %212, %214 : vector<8x256xf32>
    %216 = arith.maximumf %210, %215 : vector<8x256xf32>
    %c6_122 = arith.constant 6 : index
    %c0_123 = arith.constant 0 : index
    %c0_124 = arith.constant 0 : index
    %217 = vector.load %arg8[%c6_122, %c0_123, %c0_124] : memref<9x8x256xf32, #tpu.memory_space<vmem>>, vector<1x8x256xf32>
    %218 = vector.shape_cast %217 : vector<1x8x256xf32> to vector<8x256xf32>
    %219 = vector.extract_strided_slice %179 {offsets = [0, 6], sizes = [8, 1], strides = [1, 1]} : vector<8x9xf32> to vector<8x1xf32>
    %220 = vector.broadcast %219 : vector<8x1xf32> to vector<8x256xf32>
    %221 = arith.addf %218, %220 : vector<8x256xf32>
    %222 = arith.maximumf %216, %221 : vector<8x256xf32>
    %c7_125 = arith.constant 7 : index
    %c0_126 = arith.constant 0 : index
    %c0_127 = arith.constant 0 : index
    %223 = vector.load %arg8[%c7_125, %c0_126, %c0_127] : memref<9x8x256xf32, #tpu.memory_space<vmem>>, vector<1x8x256xf32>
    %224 = vector.shape_cast %223 : vector<1x8x256xf32> to vector<8x256xf32>
    %225 = vector.extract_strided_slice %179 {offsets = [0, 7], sizes = [8, 1], strides = [1, 1]} : vector<8x9xf32> to vector<8x1xf32>
    %226 = vector.broadcast %225 : vector<8x1xf32> to vector<8x256xf32>
    %227 = arith.addf %224, %226 : vector<8x256xf32>
    %228 = arith.maximumf %222, %227 : vector<8x256xf32>
    %c8_128 = arith.constant 8 : index
    %c0_129 = arith.constant 0 : index
    %c0_130 = arith.constant 0 : index
    %229 = vector.load %arg8[%c8_128, %c0_129, %c0_130] : memref<9x8x256xf32, #tpu.memory_space<vmem>>, vector<1x8x256xf32>
    %230 = vector.shape_cast %229 : vector<1x8x256xf32> to vector<8x256xf32>
    %231 = vector.extract_strided_slice %179 {offsets = [0, 8], sizes = [8, 1], strides = [1, 1]} : vector<8x9xf32> to vector<8x1xf32>
    %232 = vector.broadcast %231 : vector<8x1xf32> to vector<8x256xf32>
    %233 = arith.addf %230, %232 : vector<8x256xf32>
    %234 = arith.maximumf %228, %233 : vector<8x256xf32>
    %cst_131 = arith.constant 0.000000e+00 : f32
    %235 = vector.shape_cast %108 : vector<8x1xi1> to vector<8x1xi1>
    %236 = vector.broadcast %235 : vector<8x1xi1> to vector<8x256xi1>
    %237 = vector.broadcast %cst_131 : f32 to vector<8x256xf32>
    %238 = arith.select %236, %234, %237 : vector<8x256xi1>, vector<8x256xf32>
    %cst_132 = arith.constant dense<0.000000e+00> : vector<256xf32>
    %239 = vector.multi_reduction <add>, %238, %cst_132 [0] : vector<8x256xf32> to vector<256xf32>
    %240 = vector.shape_cast %239 : vector<256xf32> to vector<1x256xf32>
    %c0_133 = arith.constant 0 : index
    %c1_134 = arith.constant 1 : index
    %c0_135 = arith.constant 0 : index
    %241 = vector.load %arg7[%c0_133, %c1_134, %c0_135] : memref<1x8x256xf32, #tpu.memory_space<vmem>>, vector<1x1x256xf32>
    %242 = vector.shape_cast %241 : vector<1x1x256xf32> to vector<1x256xf32>
    %243 = arith.addf %242, %240 : vector<1x256xf32>
    %c0_136 = arith.constant 0 : index
    %c1_137 = arith.constant 1 : index
    %c0_138 = arith.constant 0 : index
    %244 = vector.load %arg7[%c0_136, %c1_137, %c0_138] : memref<1x8x256xf32, #tpu.memory_space<vmem>>, vector<1x1x256xf32>
    %245 = vector.shape_cast %244 : vector<1x1x256xf32> to vector<1x256xf32>
    %246 = vector.shape_cast %243 : vector<1x256xf32> to vector<1x1x256xf32>
    tpu.vector_store %arg7[%c0_136, %c1_137, %c0_138], %246 {strides = array<i32>} : memref<1x8x256xf32, #tpu.memory_space<vmem>>, vector<1x1x256xf32>,
    %c0_139 = arith.constant 0 : index
    %c0_140 = arith.constant 0 : index
    %c2_141 = arith.constant 2 : index
    %c0_142 = arith.constant 0 : index
    %c0_143 = arith.constant 0 : index
    %247 = vector.load %arg4[%c0_139, %c0_140, %c2_141, %c0_142, %c0_143] : memref<1x1x8x8x9xf32, #tpu.memory_space<vmem>>, vector<1x1x1x8x9xf32>
    %248 = vector.shape_cast %247 : vector<1x1x1x8x9xf32> to vector<8x9xf32>
    %cst_144 = arith.constant 0xFF800000 : f32
    %249 = vector.broadcast %cst_144 : f32 to vector<8x256xf32>
    %c0_145 = arith.constant 0 : index
    %c0_146 = arith.constant 0 : index
    %c0_147 = arith.constant 0 : index
    %250 = vector.load %arg8[%c0_145, %c0_146, %c0_147] : memref<9x8x256xf32, #tpu.memory_space<vmem>>, vector<1x8x256xf32>
    %251 = vector.shape_cast %250 : vector<1x8x256xf32> to vector<8x256xf32>
    %252 = vector.extract_strided_slice %248 {offsets = [0, 0], sizes = [8, 1], strides = [1, 1]} : vector<8x9xf32> to vector<8x1xf32>
    %253 = vector.broadcast %252 : vector<8x1xf32> to vector<8x256xf32>
    %254 = arith.addf %251, %253 : vector<8x256xf32>
    %255 = arith.maximumf %249, %254 : vector<8x256xf32>
    %c1_148 = arith.constant 1 : index
    %c0_149 = arith.constant 0 : index
    %c0_150 = arith.constant 0 : index
    %256 = vector.load %arg8[%c1_148, %c0_149, %c0_150] : memref<9x8x256xf32, #tpu.memory_space<vmem>>, vector<1x8x256xf32>
    %257 = vector.shape_cast %256 : vector<1x8x256xf32> to vector<8x256xf32>
    %258 = vector.extract_strided_slice %248 {offsets = [0, 1], sizes = [8, 1], strides = [1, 1]} : vector<8x9xf32> to vector<8x1xf32>
    %259 = vector.broadcast %258 : vector<8x1xf32> to vector<8x256xf32>
    %260 = arith.addf %257, %259 : vector<8x256xf32>
    %261 = arith.maximumf %255, %260 : vector<8x256xf32>
    %c2_151 = arith.constant 2 : index
    %c0_152 = arith.constant 0 : index
    %c0_153 = arith.constant 0 : index
    %262 = vector.load %arg8[%c2_151, %c0_152, %c0_153] : memref<9x8x256xf32, #tpu.memory_space<vmem>>, vector<1x8x256xf32>
    %263 = vector.shape_cast %262 : vector<1x8x256xf32> to vector<8x256xf32>
    %264 = vector.extract_strided_slice %248 {offsets = [0, 2], sizes = [8, 1], strides = [1, 1]} : vector<8x9xf32> to vector<8x1xf32>
    %265 = vector.broadcast %264 : vector<8x1xf32> to vector<8x256xf32>
    %266 = arith.addf %263, %265 : vector<8x256xf32>
    %267 = arith.maximumf %261, %266 : vector<8x256xf32>
    %c3_154 = arith.constant 3 : index
    %c0_155 = arith.constant 0 : index
    %c0_156 = arith.constant 0 : index
    %268 = vector.load %arg8[%c3_154, %c0_155, %c0_156] : memref<9x8x256xf32, #tpu.memory_space<vmem>>, vector<1x8x256xf32>
    %269 = vector.shape_cast %268 : vector<1x8x256xf32> to vector<8x256xf32>
    %270 = vector.extract_strided_slice %248 {offsets = [0, 3], sizes = [8, 1], strides = [1, 1]} : vector<8x9xf32> to vector<8x1xf32>
    %271 = vector.broadcast %270 : vector<8x1xf32> to vector<8x256xf32>
    %272 = arith.addf %269, %271 : vector<8x256xf32>
    %273 = arith.maximumf %267, %272 : vector<8x256xf32>
    %c4_157 = arith.constant 4 : index
    %c0_158 = arith.constant 0 : index
    %c0_159 = arith.constant 0 : index
    %274 = vector.load %arg8[%c4_157, %c0_158, %c0_159] : memref<9x8x256xf32, #tpu.memory_space<vmem>>, vector<1x8x256xf32>
    %275 = vector.shape_cast %274 : vector<1x8x256xf32> to vector<8x256xf32>
    %276 = vector.extract_strided_slice %248 {offsets = [0, 4], sizes = [8, 1], strides = [1, 1]} : vector<8x9xf32> to vector<8x1xf32>
    %277 = vector.broadcast %276 : vector<8x1xf32> to vector<8x256xf32>
    %278 = arith.addf %275, %277 : vector<8x256xf32>
    %279 = arith.maximumf %273, %278 : vector<8x256xf32>
    %c5_160 = arith.constant 5 : index
    %c0_161 = arith.constant 0 : index
    %c0_162 = arith.constant 0 : index
    %280 = vector.load %arg8[%c5_160, %c0_161, %c0_162] : memref<9x8x256xf32, #tpu.memory_space<vmem>>, vector<1x8x256xf32>
    %281 = vector.shape_cast %280 : vector<1x8x256xf32> to vector<8x256xf32>
    %282 = vector.extract_strided_slice %248 {offsets = [0, 5], sizes = [8, 1], strides = [1, 1]} : vector<8x9xf32> to vector<8x1xf32>
    %283 = vector.broadcast %282 : vector<8x1xf32> to vector<8x256xf32>
    %284 = arith.addf %281, %283 : vector<8x256xf32>
    %285 = arith.maximumf %279, %284 : vector<8x256xf32>
    %c6_163 = arith.constant 6 : index
    %c0_164 = arith.constant 0 : index
    %c0_165 = arith.constant 0 : index
    %286 = vector.load %arg8[%c6_163, %c0_164, %c0_165] : memref<9x8x256xf32, #tpu.memory_space<vmem>>, vector<1x8x256xf32>
    %287 = vector.shape_cast %286 : vector<1x8x256xf32> to vector<8x256xf32>
    %288 = vector.extract_strided_slice %248 {offsets = [0, 6], sizes = [8, 1], strides = [1, 1]} : vector<8x9xf32> to vector<8x1xf32>
    %289 = vector.broadcast %288 : vector<8x1xf32> to vector<8x256xf32>
    %290 = arith.addf %287, %289 : vector<8x256xf32>
    %291 = arith.maximumf %285, %290 : vector<8x256xf32>
    %c7_166 = arith.constant 7 : index
    %c0_167 = arith.constant 0 : index
    %c0_168 = arith.constant 0 : index
    %292 = vector.load %arg8[%c7_166, %c0_167, %c0_168] : memref<9x8x256xf32, #tpu.memory_space<vmem>>, vector<1x8x256xf32>
    %293 = vector.shape_cast %292 : vector<1x8x256xf32> to vector<8x256xf32>
    %294 = vector.extract_strided_slice %248 {offsets = [0, 7], sizes = [8, 1], strides = [1, 1]} : vector<8x9xf32> to vector<8x1xf32>
    %295 = vector.broadcast %294 : vector<8x1xf32> to vector<8x256xf32>
    %296 = arith.addf %293, %295 : vector<8x256xf32>
    %297 = arith.maximumf %291, %296 : vector<8x256xf32>
    %c8_169 = arith.constant 8 : index
    %c0_170 = arith.constant 0 : index
    %c0_171 = arith.constant 0 : index
    %298 = vector.load %arg8[%c8_169, %c0_170, %c0_171] : memref<9x8x256xf32, #tpu.memory_space<vmem>>, vector<1x8x256xf32>
    %299 = vector.shape_cast %298 : vector<1x8x256xf32> to vector<8x256xf32>
    %300 = vector.extract_strided_slice %248 {offsets = [0, 8], sizes = [8, 1], strides = [1, 1]} : vector<8x9xf32> to vector<8x1xf32>
    %301 = vector.broadcast %300 : vector<8x1xf32> to vector<8x256xf32>
    %302 = arith.addf %299, %301 : vector<8x256xf32>
    %303 = arith.maximumf %297, %302 : vector<8x256xf32>
    %cst_172 = arith.constant 0.000000e+00 : f32
    %304 = vector.shape_cast %108 : vector<8x1xi1> to vector<8x1xi1>
    %305 = vector.broadcast %304 : vector<8x1xi1> to vector<8x256xi1>
    %306 = vector.broadcast %cst_172 : f32 to vector<8x256xf32>
    %307 = arith.select %305, %303, %306 : vector<8x256xi1>, vector<8x256xf32>
    %cst_173 = arith.constant dense<0.000000e+00> : vector<256xf32>
    %308 = vector.multi_reduction <add>, %307, %cst_173 [0] : vector<8x256xf32> to vector<256xf32>
    %309 = vector.shape_cast %308 : vector<256xf32> to vector<1x256xf32>
    %c0_174 = arith.constant 0 : index
    %c2_175 = arith.constant 2 : index
    %c0_176 = arith.constant 0 : index
    %310 = vector.load %arg7[%c0_174, %c2_175, %c0_176] : memref<1x8x256xf32, #tpu.memory_space<vmem>>, vector<1x1x256xf32>
    %311 = vector.shape_cast %310 : vector<1x1x256xf32> to vector<1x256xf32>
    %312 = arith.addf %311, %309 : vector<1x256xf32>
    %c0_177 = arith.constant 0 : index
    %c2_178 = arith.constant 2 : index
    %c0_179 = arith.constant 0 : index
    %313 = vector.load %arg7[%c0_177, %c2_178, %c0_179] : memref<1x8x256xf32, #tpu.memory_space<vmem>>, vector<1x1x256xf32>
    %314 = vector.shape_cast %313 : vector<1x1x256xf32> to vector<1x256xf32>
    %315 = vector.shape_cast %312 : vector<1x256xf32> to vector<1x1x256xf32>
    tpu.vector_store %arg7[%c0_177, %c2_178, %c0_179], %315 {strides = array<i32>} : memref<1x8x256xf32, #tpu.memory_space<vmem>>, vector<1x1x256xf32>,
    %c0_180 = arith.constant 0 : index
    %c0_181 = arith.constant 0 : index
    %c3_182 = arith.constant 3 : index
    %c0_183 = arith.constant 0 : index
    %c0_184 = arith.constant 0 : index
    %316 = vector.load %arg4[%c0_180, %c0_181, %c3_182, %c0_183, %c0_184] : memref<1x1x8x8x9xf32, #tpu.memory_space<vmem>>, vector<1x1x1x8x9xf32>
    %317 = vector.shape_cast %316 : vector<1x1x1x8x9xf32> to vector<8x9xf32>
    %cst_185 = arith.constant 0xFF800000 : f32
    %318 = vector.broadcast %cst_185 : f32 to vector<8x256xf32>
    %c0_186 = arith.constant 0 : index
    %c0_187 = arith.constant 0 : index
    %c0_188 = arith.constant 0 : index
    %319 = vector.load %arg8[%c0_186, %c0_187, %c0_188] : memref<9x8x256xf32, #tpu.memory_space<vmem>>, vector<1x8x256xf32>
    %320 = vector.shape_cast %319 : vector<1x8x256xf32> to vector<8x256xf32>
    %321 = vector.extract_strided_slice %317 {offsets = [0, 0], sizes = [8, 1], strides = [1, 1]} : vector<8x9xf32> to vector<8x1xf32>
    %322 = vector.broadcast %321 : vector<8x1xf32> to vector<8x256xf32>
    %323 = arith.addf %320, %322 : vector<8x256xf32>
    %324 = arith.maximumf %318, %323 : vector<8x256xf32>
    %c1_189 = arith.constant 1 : index
    %c0_190 = arith.constant 0 : index
    %c0_191 = arith.constant 0 : index
    %325 = vector.load %arg8[%c1_189, %c0_190, %c0_191] : memref<9x8x256xf32, #tpu.memory_space<vmem>>, vector<1x8x256xf32>
    %326 = vector.shape_cast %325 : vector<1x8x256xf32> to vector<8x256xf32>
    %327 = vector.extract_strided_slice %317 {offsets = [0, 1], sizes = [8, 1], strides = [1, 1]} : vector<8x9xf32> to vector<8x1xf32>
    %328 = vector.broadcast %327 : vector<8x1xf32> to vector<8x256xf32>
    %329 = arith.addf %326, %328 : vector<8x256xf32>
    %330 = arith.maximumf %324, %329 : vector<8x256xf32>
    %c2_192 = arith.constant 2 : index
    %c0_193 = arith.constant 0 : index
    %c0_194 = arith.constant 0 : index
    %331 = vector.load %arg8[%c2_192, %c0_193, %c0_194] : memref<9x8x256xf32, #tpu.memory_space<vmem>>, vector<1x8x256xf32>
    %332 = vector.shape_cast %331 : vector<1x8x256xf32> to vector<8x256xf32>
    %333 = vector.extract_strided_slice %317 {offsets = [0, 2], sizes = [8, 1], strides = [1, 1]} : vector<8x9xf32> to vector<8x1xf32>
    %334 = vector.broadcast %333 : vector<8x1xf32> to vector<8x256xf32>
    %335 = arith.addf %332, %334 : vector<8x256xf32>
    %336 = arith.maximumf %330, %335 : vector<8x256xf32>
    %c3_195 = arith.constant 3 : index
    %c0_196 = arith.constant 0 : index
    %c0_197 = arith.constant 0 : index
    %337 = vector.load %arg8[%c3_195, %c0_196, %c0_197] : memref<9x8x256xf32, #tpu.memory_space<vmem>>, vector<1x8x256xf32>
    %338 = vector.shape_cast %337 : vector<1x8x256xf32> to vector<8x256xf32>
    %339 = vector.extract_strided_slice %317 {offsets = [0, 3], sizes = [8, 1], strides = [1, 1]} : vector<8x9xf32> to vector<8x1xf32>
    %340 = vector.broadcast %339 : vector<8x1xf32> to vector<8x256xf32>
    %341 = arith.addf %338, %340 : vector<8x256xf32>
    %342 = arith.maximumf %336, %341 : vector<8x256xf32>
    %c4_198 = arith.constant 4 : index
    %c0_199 = arith.constant 0 : index
    %c0_200 = arith.constant 0 : index
    %343 = vector.load %arg8[%c4_198, %c0_199, %c0_200] : memref<9x8x256xf32, #tpu.memory_space<vmem>>, vector<1x8x256xf32>
    %344 = vector.shape_cast %343 : vector<1x8x256xf32> to vector<8x256xf32>
    %345 = vector.extract_strided_slice %317 {offsets = [0, 4], sizes = [8, 1], strides = [1, 1]} : vector<8x9xf32> to vector<8x1xf32>
    %346 = vector.broadcast %345 : vector<8x1xf32> to vector<8x256xf32>
    %347 = arith.addf %344, %346 : vector<8x256xf32>
    %348 = arith.maximumf %342, %347 : vector<8x256xf32>
    %c5_201 = arith.constant 5 : index
    %c0_202 = arith.constant 0 : index
    %c0_203 = arith.constant 0 : index
    %349 = vector.load %arg8[%c5_201, %c0_202, %c0_203] : memref<9x8x256xf32, #tpu.memory_space<vmem>>, vector<1x8x256xf32>
    %350 = vector.shape_cast %349 : vector<1x8x256xf32> to vector<8x256xf32>
    %351 = vector.extract_strided_slice %317 {offsets = [0, 5], sizes = [8, 1], strides = [1, 1]} : vector<8x9xf32> to vector<8x1xf32>
    %352 = vector.broadcast %351 : vector<8x1xf32> to vector<8x256xf32>
    %353 = arith.addf %350, %352 : vector<8x256xf32>
    %354 = arith.maximumf %348, %353 : vector<8x256xf32>
    %c6_204 = arith.constant 6 : index
    %c0_205 = arith.constant 0 : index
    %c0_206 = arith.constant 0 : index
    %355 = vector.load %arg8[%c6_204, %c0_205, %c0_206] : memref<9x8x256xf32, #tpu.memory_space<vmem>>, vector<1x8x256xf32>
    %356 = vector.shape_cast %355 : vector<1x8x256xf32> to vector<8x256xf32>
    %357 = vector.extract_strided_slice %317 {offsets = [0, 6], sizes = [8, 1], strides = [1, 1]} : vector<8x9xf32> to vector<8x1xf32>
    %358 = vector.broadcast %357 : vector<8x1xf32> to vector<8x256xf32>
    %359 = arith.addf %356, %358 : vector<8x256xf32>
    %360 = arith.maximumf %354, %359 : vector<8x256xf32>
    %c7_207 = arith.constant 7 : index
    %c0_208 = arith.constant 0 : index
    %c0_209 = arith.constant 0 : index
    %361 = vector.load %arg8[%c7_207, %c0_208, %c0_209] : memref<9x8x256xf32, #tpu.memory_space<vmem>>, vector<1x8x256xf32>
    %362 = vector.shape_cast %361 : vector<1x8x256xf32> to vector<8x256xf32>
    %363 = vector.extract_strided_slice %317 {offsets = [0, 7], sizes = [8, 1], strides = [1, 1]} : vector<8x9xf32> to vector<8x1xf32>
    %364 = vector.broadcast %363 : vector<8x1xf32> to vector<8x256xf32>
    %365 = arith.addf %362, %364 : vector<8x256xf32>
    %366 = arith.maximumf %360, %365 : vector<8x256xf32>
    %c8_210 = arith.constant 8 : index
    %c0_211 = arith.constant 0 : index
    %c0_212 = arith.constant 0 : index
    %367 = vector.load %arg8[%c8_210, %c0_211, %c0_212] : memref<9x8x256xf32, #tpu.memory_space<vmem>>, vector<1x8x256xf32>
    %368 = vector.shape_cast %367 : vector<1x8x256xf32> to vector<8x256xf32>
    %369 = vector.extract_strided_slice %317 {offsets = [0, 8], sizes = [8, 1], strides = [1, 1]} : vector<8x9xf32> to vector<8x1xf32>
    %370 = vector.broadcast %369 : vector<8x1xf32> to vector<8x256xf32>
    %371 = arith.addf %368, %370 : vector<8x256xf32>
    %372 = arith.maximumf %366, %371 : vector<8x256xf32>
    %cst_213 = arith.constant 0.000000e+00 : f32
    %373 = vector.shape_cast %108 : vector<8x1xi1> to vector<8x1xi1>
    %374 = vector.broadcast %373 : vector<8x1xi1> to vector<8x256xi1>
    %375 = vector.broadcast %cst_213 : f32 to vector<8x256xf32>
    %376 = arith.select %374, %372, %375 : vector<8x256xi1>, vector<8x256xf32>
    %cst_214 = arith.constant dense<0.000000e+00> : vector<256xf32>
    %377 = vector.multi_reduction <add>, %376, %cst_214 [0] : vector<8x256xf32> to vector<256xf32>
    %378 = vector.shape_cast %377 : vector<256xf32> to vector<1x256xf32>
    %c0_215 = arith.constant 0 : index
    %c3_216 = arith.constant 3 : index
    %c0_217 = arith.constant 0 : index
    %379 = vector.load %arg7[%c0_215, %c3_216, %c0_217] : memref<1x8x256xf32, #tpu.memory_space<vmem>>, vector<1x1x256xf32>
    %380 = vector.shape_cast %379 : vector<1x1x256xf32> to vector<1x256xf32>
    %381 = arith.addf %380, %378 : vector<1x256xf32>
    %c0_218 = arith.constant 0 : index
    %c3_219 = arith.constant 3 : index
    %c0_220 = arith.constant 0 : index
    %382 = vector.load %arg7[%c0_218, %c3_219, %c0_220] : memref<1x8x256xf32, #tpu.memory_space<vmem>>, vector<1x1x256xf32>
    %383 = vector.shape_cast %382 : vector<1x1x256xf32> to vector<1x256xf32>
    %384 = vector.shape_cast %381 : vector<1x256xf32> to vector<1x1x256xf32>
    tpu.vector_store %arg7[%c0_218, %c3_219, %c0_220], %384 {strides = array<i32>} : memref<1x8x256xf32, #tpu.memory_space<vmem>>, vector<1x1x256xf32>,
    %c0_221 = arith.constant 0 : index
    %c0_222 = arith.constant 0 : index
    %c4_223 = arith.constant 4 : index
    %c0_224 = arith.constant 0 : index
    %c0_225 = arith.constant 0 : index
    %385 = vector.load %arg4[%c0_221, %c0_222, %c4_223, %c0_224, %c0_225] : memref<1x1x8x8x9xf32, #tpu.memory_space<vmem>>, vector<1x1x1x8x9xf32>
    %386 = vector.shape_cast %385 : vector<1x1x1x8x9xf32> to vector<8x9xf32>
    %cst_226 = arith.constant 0xFF800000 : f32
    %387 = vector.broadcast %cst_226 : f32 to vector<8x256xf32>
    %c0_227 = arith.constant 0 : index
    %c0_228 = arith.constant 0 : index
    %c0_229 = arith.constant 0 : index
    %388 = vector.load %arg8[%c0_227, %c0_228, %c0_229] : memref<9x8x256xf32, #tpu.memory_space<vmem>>, vector<1x8x256xf32>
    %389 = vector.shape_cast %388 : vector<1x8x256xf32> to vector<8x256xf32>
    %390 = vector.extract_strided_slice %386 {offsets = [0, 0], sizes = [8, 1], strides = [1, 1]} : vector<8x9xf32> to vector<8x1xf32>
    %391 = vector.broadcast %390 : vector<8x1xf32> to vector<8x256xf32>
    %392 = arith.addf %389, %391 : vector<8x256xf32>
    %393 = arith.maximumf %387, %392 : vector<8x256xf32>
    %c1_230 = arith.constant 1 : index
    %c0_231 = arith.constant 0 : index
    %c0_232 = arith.constant 0 : index
    %394 = vector.load %arg8[%c1_230, %c0_231, %c0_232] : memref<9x8x256xf32, #tpu.memory_space<vmem>>, vector<1x8x256xf32>
    %395 = vector.shape_cast %394 : vector<1x8x256xf32> to vector<8x256xf32>
    %396 = vector.extract_strided_slice %386 {offsets = [0, 1], sizes = [8, 1], strides = [1, 1]} : vector<8x9xf32> to vector<8x1xf32>
    %397 = vector.broadcast %396 : vector<8x1xf32> to vector<8x256xf32>
    %398 = arith.addf %395, %397 : vector<8x256xf32>
    %399 = arith.maximumf %393, %398 : vector<8x256xf32>
    %c2_233 = arith.constant 2 : index
    %c0_234 = arith.constant 0 : index
    %c0_235 = arith.constant 0 : index
    %400 = vector.load %arg8[%c2_233, %c0_234, %c0_235] : memref<9x8x256xf32, #tpu.memory_space<vmem>>, vector<1x8x256xf32>
    %401 = vector.shape_cast %400 : vector<1x8x256xf32> to vector<8x256xf32>
    %402 = vector.extract_strided_slice %386 {offsets = [0, 2], sizes = [8, 1], strides = [1, 1]} : vector<8x9xf32> to vector<8x1xf32>
    %403 = vector.broadcast %402 : vector<8x1xf32> to vector<8x256xf32>
    %404 = arith.addf %401, %403 : vector<8x256xf32>
    %405 = arith.maximumf %399, %404 : vector<8x256xf32>
    %c3_236 = arith.constant 3 : index
    %c0_237 = arith.constant 0 : index
    %c0_238 = arith.constant 0 : index
    %406 = vector.load %arg8[%c3_236, %c0_237, %c0_238] : memref<9x8x256xf32, #tpu.memory_space<vmem>>, vector<1x8x256xf32>
    %407 = vector.shape_cast %406 : vector<1x8x256xf32> to vector<8x256xf32>
    %408 = vector.extract_strided_slice %386 {offsets = [0, 3], sizes = [8, 1], strides = [1, 1]} : vector<8x9xf32> to vector<8x1xf32>
    %409 = vector.broadcast %408 : vector<8x1xf32> to vector<8x256xf32>
    %410 = arith.addf %407, %409 : vector<8x256xf32>
    %411 = arith.maximumf %405, %410 : vector<8x256xf32>
    %c4_239 = arith.constant 4 : index
    %c0_240 = arith.constant 0 : index
    %c0_241 = arith.constant 0 : index
    %412 = vector.load %arg8[%c4_239, %c0_240, %c0_241] : memref<9x8x256xf32, #tpu.memory_space<vmem>>, vector<1x8x256xf32>
    %413 = vector.shape_cast %412 : vector<1x8x256xf32> to vector<8x256xf32>
    %414 = vector.extract_strided_slice %386 {offsets = [0, 4], sizes = [8, 1], strides = [1, 1]} : vector<8x9xf32> to vector<8x1xf32>
    %415 = vector.broadcast %414 : vector<8x1xf32> to vector<8x256xf32>
    %416 = arith.addf %413, %415 : vector<8x256xf32>
    %417 = arith.maximumf %411, %416 : vector<8x256xf32>
    %c5_242 = arith.constant 5 : index
    %c0_243 = arith.constant 0 : index
    %c0_244 = arith.constant 0 : index
    %418 = vector.load %arg8[%c5_242, %c0_243, %c0_244] : memref<9x8x256xf32, #tpu.memory_space<vmem>>, vector<1x8x256xf32>
    %419 = vector.shape_cast %418 : vector<1x8x256xf32> to vector<8x256xf32>
    %420 = vector.extract_strided_slice %386 {offsets = [0, 5], sizes = [8, 1], strides = [1, 1]} : vector<8x9xf32> to vector<8x1xf32>
    %421 = vector.broadcast %420 : vector<8x1xf32> to vector<8x256xf32>
    %422 = arith.addf %419, %421 : vector<8x256xf32>
    %423 = arith.maximumf %417, %422 : vector<8x256xf32>
    %c6_245 = arith.constant 6 : index
    %c0_246 = arith.constant 0 : index
    %c0_247 = arith.constant 0 : index
    %424 = vector.load %arg8[%c6_245, %c0_246, %c0_247] : memref<9x8x256xf32, #tpu.memory_space<vmem>>, vector<1x8x256xf32>
    %425 = vector.shape_cast %424 : vector<1x8x256xf32> to vector<8x256xf32>
    %426 = vector.extract_strided_slice %386 {offsets = [0, 6], sizes = [8, 1], strides = [1, 1]} : vector<8x9xf32> to vector<8x1xf32>
    %427 = vector.broadcast %426 : vector<8x1xf32> to vector<8x256xf32>
    %428 = arith.addf %425, %427 : vector<8x256xf32>
    %429 = arith.maximumf %423, %428 : vector<8x256xf32>
    %c7_248 = arith.constant 7 : index
    %c0_249 = arith.constant 0 : index
    %c0_250 = arith.constant 0 : index
    %430 = vector.load %arg8[%c7_248, %c0_249, %c0_250] : memref<9x8x256xf32, #tpu.memory_space<vmem>>, vector<1x8x256xf32>
    %431 = vector.shape_cast %430 : vector<1x8x256xf32> to vector<8x256xf32>
    %432 = vector.extract_strided_slice %386 {offsets = [0, 7], sizes = [8, 1], strides = [1, 1]} : vector<8x9xf32> to vector<8x1xf32>
    %433 = vector.broadcast %432 : vector<8x1xf32> to vector<8x256xf32>
    %434 = arith.addf %431, %433 : vector<8x256xf32>
    %435 = arith.maximumf %429, %434 : vector<8x256xf32>
    %c8_251 = arith.constant 8 : index
    %c0_252 = arith.constant 0 : index
    %c0_253 = arith.constant 0 : index
    %436 = vector.load %arg8[%c8_251, %c0_252, %c0_253] : memref<9x8x256xf32, #tpu.memory_space<vmem>>, vector<1x8x256xf32>
    %437 = vector.shape_cast %436 : vector<1x8x256xf32> to vector<8x256xf32>
    %438 = vector.extract_strided_slice %386 {offsets = [0, 8], sizes = [8, 1], strides = [1, 1]} : vector<8x9xf32> to vector<8x1xf32>
    %439 = vector.broadcast %438 : vector<8x1xf32> to vector<8x256xf32>
    %440 = arith.addf %437, %439 : vector<8x256xf32>
    %441 = arith.maximumf %435, %440 : vector<8x256xf32>
    %cst_254 = arith.constant 0.000000e+00 : f32
    %442 = vector.shape_cast %108 : vector<8x1xi1> to vector<8x1xi1>
    %443 = vector.broadcast %442 : vector<8x1xi1> to vector<8x256xi1>
    %444 = vector.broadcast %cst_254 : f32 to vector<8x256xf32>
    %445 = arith.select %443, %441, %444 : vector<8x256xi1>, vector<8x256xf32>
    %cst_255 = arith.constant dense<0.000000e+00> : vector<256xf32>
    %446 = vector.multi_reduction <add>, %445, %cst_255 [0] : vector<8x256xf32> to vector<256xf32>
    %447 = vector.shape_cast %446 : vector<256xf32> to vector<1x256xf32>
    %c0_256 = arith.constant 0 : index
    %c4_257 = arith.constant 4 : index
    %c0_258 = arith.constant 0 : index
    %448 = vector.load %arg7[%c0_256, %c4_257, %c0_258] : memref<1x8x256xf32, #tpu.memory_space<vmem>>, vector<1x1x256xf32>
    %449 = vector.shape_cast %448 : vector<1x1x256xf32> to vector<1x256xf32>
    %450 = arith.addf %449, %447 : vector<1x256xf32>
    %c0_259 = arith.constant 0 : index
    %c4_260 = arith.constant 4 : index
    %c0_261 = arith.constant 0 : index
    %451 = vector.load %arg7[%c0_259, %c4_260, %c0_261] : memref<1x8x256xf32, #tpu.memory_space<vmem>>, vector<1x1x256xf32>
    %452 = vector.shape_cast %451 : vector<1x1x256xf32> to vector<1x256xf32>
    %453 = vector.shape_cast %450 : vector<1x256xf32> to vector<1x1x256xf32>
    tpu.vector_store %arg7[%c0_259, %c4_260, %c0_261], %453 {strides = array<i32>} : memref<1x8x256xf32, #tpu.memory_space<vmem>>, vector<1x1x256xf32>,
    %c0_262 = arith.constant 0 : index
    %c0_263 = arith.constant 0 : index
    %c5_264 = arith.constant 5 : index
    %c0_265 = arith.constant 0 : index
    %c0_266 = arith.constant 0 : index
    %454 = vector.load %arg4[%c0_262, %c0_263, %c5_264, %c0_265, %c0_266] : memref<1x1x8x8x9xf32, #tpu.memory_space<vmem>>, vector<1x1x1x8x9xf32>
    %455 = vector.shape_cast %454 : vector<1x1x1x8x9xf32> to vector<8x9xf32>
    %cst_267 = arith.constant 0xFF800000 : f32
    %456 = vector.broadcast %cst_267 : f32 to vector<8x256xf32>
    %c0_268 = arith.constant 0 : index
    %c0_269 = arith.constant 0 : index
    %c0_270 = arith.constant 0 : index
    %457 = vector.load %arg8[%c0_268, %c0_269, %c0_270] : memref<9x8x256xf32, #tpu.memory_space<vmem>>, vector<1x8x256xf32>
    %458 = vector.shape_cast %457 : vector<1x8x256xf32> to vector<8x256xf32>
    %459 = vector.extract_strided_slice %455 {offsets = [0, 0], sizes = [8, 1], strides = [1, 1]} : vector<8x9xf32> to vector<8x1xf32>
    %460 = vector.broadcast %459 : vector<8x1xf32> to vector<8x256xf32>
    %461 = arith.addf %458, %460 : vector<8x256xf32>
    %462 = arith.maximumf %456, %461 : vector<8x256xf32>
    %c1_271 = arith.constant 1 : index
    %c0_272 = arith.constant 0 : index
    %c0_273 = arith.constant 0 : index
    %463 = vector.load %arg8[%c1_271, %c0_272, %c0_273] : memref<9x8x256xf32, #tpu.memory_space<vmem>>, vector<1x8x256xf32>
    %464 = vector.shape_cast %463 : vector<1x8x256xf32> to vector<8x256xf32>
    %465 = vector.extract_strided_slice %455 {offsets = [0, 1], sizes = [8, 1], strides = [1, 1]} : vector<8x9xf32> to vector<8x1xf32>
    %466 = vector.broadcast %465 : vector<8x1xf32> to vector<8x256xf32>
    %467 = arith.addf %464, %466 : vector<8x256xf32>
    %468 = arith.maximumf %462, %467 : vector<8x256xf32>
    %c2_274 = arith.constant 2 : index
    %c0_275 = arith.constant 0 : index
    %c0_276 = arith.constant 0 : index
    %469 = vector.load %arg8[%c2_274, %c0_275, %c0_276] : memref<9x8x256xf32, #tpu.memory_space<vmem>>, vector<1x8x256xf32>
    %470 = vector.shape_cast %469 : vector<1x8x256xf32> to vector<8x256xf32>
    %471 = vector.extract_strided_slice %455 {offsets = [0, 2], sizes = [8, 1], strides = [1, 1]} : vector<8x9xf32> to vector<8x1xf32>
    %472 = vector.broadcast %471 : vector<8x1xf32> to vector<8x256xf32>
    %473 = arith.addf %470, %472 : vector<8x256xf32>
    %474 = arith.maximumf %468, %473 : vector<8x256xf32>
    %c3_277 = arith.constant 3 : index
    %c0_278 = arith.constant 0 : index
    %c0_279 = arith.constant 0 : index
    %475 = vector.load %arg8[%c3_277, %c0_278, %c0_279] : memref<9x8x256xf32, #tpu.memory_space<vmem>>, vector<1x8x256xf32>
    %476 = vector.shape_cast %475 : vector<1x8x256xf32> to vector<8x256xf32>
    %477 = vector.extract_strided_slice %455 {offsets = [0, 3], sizes = [8, 1], strides = [1, 1]} : vector<8x9xf32> to vector<8x1xf32>
    %478 = vector.broadcast %477 : vector<8x1xf32> to vector<8x256xf32>
    %479 = arith.addf %476, %478 : vector<8x256xf32>
    %480 = arith.maximumf %474, %479 : vector<8x256xf32>
    %c4_280 = arith.constant 4 : index
    %c0_281 = arith.constant 0 : index
    %c0_282 = arith.constant 0 : index
    %481 = vector.load %arg8[%c4_280, %c0_281, %c0_282] : memref<9x8x256xf32, #tpu.memory_space<vmem>>, vector<1x8x256xf32>
    %482 = vector.shape_cast %481 : vector<1x8x256xf32> to vector<8x256xf32>
    %483 = vector.extract_strided_slice %455 {offsets = [0, 4], sizes = [8, 1], strides = [1, 1]} : vector<8x9xf32> to vector<8x1xf32>
    %484 = vector.broadcast %483 : vector<8x1xf32> to vector<8x256xf32>
    %485 = arith.addf %482, %484 : vector<8x256xf32>
    %486 = arith.maximumf %480, %485 : vector<8x256xf32>
    %c5_283 = arith.constant 5 : index
    %c0_284 = arith.constant 0 : index
    %c0_285 = arith.constant 0 : index
    %487 = vector.load %arg8[%c5_283, %c0_284, %c0_285] : memref<9x8x256xf32, #tpu.memory_space<vmem>>, vector<1x8x256xf32>
    %488 = vector.shape_cast %487 : vector<1x8x256xf32> to vector<8x256xf32>
    %489 = vector.extract_strided_slice %455 {offsets = [0, 5], sizes = [8, 1], strides = [1, 1]} : vector<8x9xf32> to vector<8x1xf32>
    %490 = vector.broadcast %489 : vector<8x1xf32> to vector<8x256xf32>
    %491 = arith.addf %488, %490 : vector<8x256xf32>
    %492 = arith.maximumf %486, %491 : vector<8x256xf32>
    %c6_286 = arith.constant 6 : index
    %c0_287 = arith.constant 0 : index
    %c0_288 = arith.constant 0 : index
    %493 = vector.load %arg8[%c6_286, %c0_287, %c0_288] : memref<9x8x256xf32, #tpu.memory_space<vmem>>, vector<1x8x256xf32>
    %494 = vector.shape_cast %493 : vector<1x8x256xf32> to vector<8x256xf32>
    %495 = vector.extract_strided_slice %455 {offsets = [0, 6], sizes = [8, 1], strides = [1, 1]} : vector<8x9xf32> to vector<8x1xf32>
    %496 = vector.broadcast %495 : vector<8x1xf32> to vector<8x256xf32>
    %497 = arith.addf %494, %496 : vector<8x256xf32>
    %498 = arith.maximumf %492, %497 : vector<8x256xf32>
    %c7_289 = arith.constant 7 : index
    %c0_290 = arith.constant 0 : index
    %c0_291 = arith.constant 0 : index
    %499 = vector.load %arg8[%c7_289, %c0_290, %c0_291] : memref<9x8x256xf32, #tpu.memory_space<vmem>>, vector<1x8x256xf32>
    %500 = vector.shape_cast %499 : vector<1x8x256xf32> to vector<8x256xf32>
    %501 = vector.extract_strided_slice %455 {offsets = [0, 7], sizes = [8, 1], strides = [1, 1]} : vector<8x9xf32> to vector<8x1xf32>
    %502 = vector.broadcast %501 : vector<8x1xf32> to vector<8x256xf32>
    %503 = arith.addf %500, %502 : vector<8x256xf32>
    %504 = arith.maximumf %498, %503 : vector<8x256xf32>
    %c8_292 = arith.constant 8 : index
    %c0_293 = arith.constant 0 : index
    %c0_294 = arith.constant 0 : index
    %505 = vector.load %arg8[%c8_292, %c0_293, %c0_294] : memref<9x8x256xf32, #tpu.memory_space<vmem>>, vector<1x8x256xf32>
    %506 = vector.shape_cast %505 : vector<1x8x256xf32> to vector<8x256xf32>
    %507 = vector.extract_strided_slice %455 {offsets = [0, 8], sizes = [8, 1], strides = [1, 1]} : vector<8x9xf32> to vector<8x1xf32>
    %508 = vector.broadcast %507 : vector<8x1xf32> to vector<8x256xf32>
    %509 = arith.addf %506, %508 : vector<8x256xf32>
    %510 = arith.maximumf %504, %509 : vector<8x256xf32>
    %cst_295 = arith.constant 0.000000e+00 : f32
    %511 = vector.shape_cast %108 : vector<8x1xi1> to vector<8x1xi1>
    %512 = vector.broadcast %511 : vector<8x1xi1> to vector<8x256xi1>
    %513 = vector.broadcast %cst_295 : f32 to vector<8x256xf32>
    %514 = arith.select %512, %510, %513 : vector<8x256xi1>, vector<8x256xf32>
    %cst_296 = arith.constant dense<0.000000e+00> : vector<256xf32>
    %515 = vector.multi_reduction <add>, %514, %cst_296 [0] : vector<8x256xf32> to vector<256xf32>
    %516 = vector.shape_cast %515 : vector<256xf32> to vector<1x256xf32>
    %c0_297 = arith.constant 0 : index
    %c5_298 = arith.constant 5 : index
    %c0_299 = arith.constant 0 : index
    %517 = vector.load %arg7[%c0_297, %c5_298, %c0_299] : memref<1x8x256xf32, #tpu.memory_space<vmem>>, vector<1x1x256xf32>
    %518 = vector.shape_cast %517 : vector<1x1x256xf32> to vector<1x256xf32>
    %519 = arith.addf %518, %516 : vector<1x256xf32>
    %c0_300 = arith.constant 0 : index
    %c5_301 = arith.constant 5 : index
    %c0_302 = arith.constant 0 : index
    %520 = vector.load %arg7[%c0_300, %c5_301, %c0_302] : memref<1x8x256xf32, #tpu.memory_space<vmem>>, vector<1x1x256xf32>
    %521 = vector.shape_cast %520 : vector<1x1x256xf32> to vector<1x256xf32>
    %522 = vector.shape_cast %519 : vector<1x256xf32> to vector<1x1x256xf32>
    tpu.vector_store %arg7[%c0_300, %c5_301, %c0_302], %522 {strides = array<i32>} : memref<1x8x256xf32, #tpu.memory_space<vmem>>, vector<1x1x256xf32>,
    %c0_303 = arith.constant 0 : index
    %c0_304 = arith.constant 0 : index
    %c6_305 = arith.constant 6 : index
    %c0_306 = arith.constant 0 : index
    %c0_307 = arith.constant 0 : index
    %523 = vector.load %arg4[%c0_303, %c0_304, %c6_305, %c0_306, %c0_307] : memref<1x1x8x8x9xf32, #tpu.memory_space<vmem>>, vector<1x1x1x8x9xf32>
    %524 = vector.shape_cast %523 : vector<1x1x1x8x9xf32> to vector<8x9xf32>
    %cst_308 = arith.constant 0xFF800000 : f32
    %525 = vector.broadcast %cst_308 : f32 to vector<8x256xf32>
    %c0_309 = arith.constant 0 : index
    %c0_310 = arith.constant 0 : index
    %c0_311 = arith.constant 0 : index
    %526 = vector.load %arg8[%c0_309, %c0_310, %c0_311] : memref<9x8x256xf32, #tpu.memory_space<vmem>>, vector<1x8x256xf32>
    %527 = vector.shape_cast %526 : vector<1x8x256xf32> to vector<8x256xf32>
    %528 = vector.extract_strided_slice %524 {offsets = [0, 0], sizes = [8, 1], strides = [1, 1]} : vector<8x9xf32> to vector<8x1xf32>
    %529 = vector.broadcast %528 : vector<8x1xf32> to vector<8x256xf32>
    %530 = arith.addf %527, %529 : vector<8x256xf32>
    %531 = arith.maximumf %525, %530 : vector<8x256xf32>
    %c1_312 = arith.constant 1 : index
    %c0_313 = arith.constant 0 : index
    %c0_314 = arith.constant 0 : index
    %532 = vector.load %arg8[%c1_312, %c0_313, %c0_314] : memref<9x8x256xf32, #tpu.memory_space<vmem>>, vector<1x8x256xf32>
    %533 = vector.shape_cast %532 : vector<1x8x256xf32> to vector<8x256xf32>
    %534 = vector.extract_strided_slice %524 {offsets = [0, 1], sizes = [8, 1], strides = [1, 1]} : vector<8x9xf32> to vector<8x1xf32>
    %535 = vector.broadcast %534 : vector<8x1xf32> to vector<8x256xf32>
    %536 = arith.addf %533, %535 : vector<8x256xf32>
    %537 = arith.maximumf %531, %536 : vector<8x256xf32>
    %c2_315 = arith.constant 2 : index
    %c0_316 = arith.constant 0 : index
    %c0_317 = arith.constant 0 : index
    %538 = vector.load %arg8[%c2_315, %c0_316, %c0_317] : memref<9x8x256xf32, #tpu.memory_space<vmem>>, vector<1x8x256xf32>
    %539 = vector.shape_cast %538 : vector<1x8x256xf32> to vector<8x256xf32>
    %540 = vector.extract_strided_slice %524 {offsets = [0, 2], sizes = [8, 1], strides = [1, 1]} : vector<8x9xf32> to vector<8x1xf32>
    %541 = vector.broadcast %540 : vector<8x1xf32> to vector<8x256xf32>
    %542 = arith.addf %539, %541 : vector<8x256xf32>
    %543 = arith.maximumf %537, %542 : vector<8x256xf32>
    %c3_318 = arith.constant 3 : index
    %c0_319 = arith.constant 0 : index
    %c0_320 = arith.constant 0 : index
    %544 = vector.load %arg8[%c3_318, %c0_319, %c0_320] : memref<9x8x256xf32, #tpu.memory_space<vmem>>, vector<1x8x256xf32>
    %545 = vector.shape_cast %544 : vector<1x8x256xf32> to vector<8x256xf32>
    %546 = vector.extract_strided_slice %524 {offsets = [0, 3], sizes = [8, 1], strides = [1, 1]} : vector<8x9xf32> to vector<8x1xf32>
    %547 = vector.broadcast %546 : vector<8x1xf32> to vector<8x256xf32>
    %548 = arith.addf %545, %547 : vector<8x256xf32>
    %549 = arith.maximumf %543, %548 : vector<8x256xf32>
    %c4_321 = arith.constant 4 : index
    %c0_322 = arith.constant 0 : index
    %c0_323 = arith.constant 0 : index
    %550 = vector.load %arg8[%c4_321, %c0_322, %c0_323] : memref<9x8x256xf32, #tpu.memory_space<vmem>>, vector<1x8x256xf32>
    %551 = vector.shape_cast %550 : vector<1x8x256xf32> to vector<8x256xf32>
    %552 = vector.extract_strided_slice %524 {offsets = [0, 4], sizes = [8, 1], strides = [1, 1]} : vector<8x9xf32> to vector<8x1xf32>
    %553 = vector.broadcast %552 : vector<8x1xf32> to vector<8x256xf32>
    %554 = arith.addf %551, %553 : vector<8x256xf32>
    %555 = arith.maximumf %549, %554 : vector<8x256xf32>
    %c5_324 = arith.constant 5 : index
    %c0_325 = arith.constant 0 : index
    %c0_326 = arith.constant 0 : index
    %556 = vector.load %arg8[%c5_324, %c0_325, %c0_326] : memref<9x8x256xf32, #tpu.memory_space<vmem>>, vector<1x8x256xf32>
    %557 = vector.shape_cast %556 : vector<1x8x256xf32> to vector<8x256xf32>
    %558 = vector.extract_strided_slice %524 {offsets = [0, 5], sizes = [8, 1], strides = [1, 1]} : vector<8x9xf32> to vector<8x1xf32>
    %559 = vector.broadcast %558 : vector<8x1xf32> to vector<8x256xf32>
    %560 = arith.addf %557, %559 : vector<8x256xf32>
    %561 = arith.maximumf %555, %560 : vector<8x256xf32>
    %c6_327 = arith.constant 6 : index
    %c0_328 = arith.constant 0 : index
    %c0_329 = arith.constant 0 : index
    %562 = vector.load %arg8[%c6_327, %c0_328, %c0_329] : memref<9x8x256xf32, #tpu.memory_space<vmem>>, vector<1x8x256xf32>
    %563 = vector.shape_cast %562 : vector<1x8x256xf32> to vector<8x256xf32>
    %564 = vector.extract_strided_slice %524 {offsets = [0, 6], sizes = [8, 1], strides = [1, 1]} : vector<8x9xf32> to vector<8x1xf32>
    %565 = vector.broadcast %564 : vector<8x1xf32> to vector<8x256xf32>
    %566 = arith.addf %563, %565 : vector<8x256xf32>
    %567 = arith.maximumf %561, %566 : vector<8x256xf32>
    %c7_330 = arith.constant 7 : index
    %c0_331 = arith.constant 0 : index
    %c0_332 = arith.constant 0 : index
    %568 = vector.load %arg8[%c7_330, %c0_331, %c0_332] : memref<9x8x256xf32, #tpu.memory_space<vmem>>, vector<1x8x256xf32>
    %569 = vector.shape_cast %568 : vector<1x8x256xf32> to vector<8x256xf32>
    %570 = vector.extract_strided_slice %524 {offsets = [0, 7], sizes = [8, 1], strides = [1, 1]} : vector<8x9xf32> to vector<8x1xf32>
    %571 = vector.broadcast %570 : vector<8x1xf32> to vector<8x256xf32>
    %572 = arith.addf %569, %571 : vector<8x256xf32>
    %573 = arith.maximumf %567, %572 : vector<8x256xf32>
    %c8_333 = arith.constant 8 : index
    %c0_334 = arith.constant 0 : index
    %c0_335 = arith.constant 0 : index
    %574 = vector.load %arg8[%c8_333, %c0_334, %c0_335] : memref<9x8x256xf32, #tpu.memory_space<vmem>>, vector<1x8x256xf32>
    %575 = vector.shape_cast %574 : vector<1x8x256xf32> to vector<8x256xf32>
    %576 = vector.extract_strided_slice %524 {offsets = [0, 8], sizes = [8, 1], strides = [1, 1]} : vector<8x9xf32> to vector<8x1xf32>
    %577 = vector.broadcast %576 : vector<8x1xf32> to vector<8x256xf32>
    %578 = arith.addf %575, %577 : vector<8x256xf32>
    %579 = arith.maximumf %573, %578 : vector<8x256xf32>
    %cst_336 = arith.constant 0.000000e+00 : f32
    %580 = vector.shape_cast %108 : vector<8x1xi1> to vector<8x1xi1>
    %581 = vector.broadcast %580 : vector<8x1xi1> to vector<8x256xi1>
    %582 = vector.broadcast %cst_336 : f32 to vector<8x256xf32>
    %583 = arith.select %581, %579, %582 : vector<8x256xi1>, vector<8x256xf32>
    %cst_337 = arith.constant dense<0.000000e+00> : vector<256xf32>
    %584 = vector.multi_reduction <add>, %583, %cst_337 [0] : vector<8x256xf32> to vector<256xf32>
    %585 = vector.shape_cast %584 : vector<256xf32> to vector<1x256xf32>
    %c0_338 = arith.constant 0 : index
    %c6_339 = arith.constant 6 : index
    %c0_340 = arith.constant 0 : index
    %586 = vector.load %arg7[%c0_338, %c6_339, %c0_340] : memref<1x8x256xf32, #tpu.memory_space<vmem>>, vector<1x1x256xf32>
    %587 = vector.shape_cast %586 : vector<1x1x256xf32> to vector<1x256xf32>
    %588 = arith.addf %587, %585 : vector<1x256xf32>
    %c0_341 = arith.constant 0 : index
    %c6_342 = arith.constant 6 : index
    %c0_343 = arith.constant 0 : index
    %589 = vector.load %arg7[%c0_341, %c6_342, %c0_343] : memref<1x8x256xf32, #tpu.memory_space<vmem>>, vector<1x1x256xf32>
    %590 = vector.shape_cast %589 : vector<1x1x256xf32> to vector<1x256xf32>
    %591 = vector.shape_cast %588 : vector<1x256xf32> to vector<1x1x256xf32>
    tpu.vector_store %arg7[%c0_341, %c6_342, %c0_343], %591 {strides = array<i32>} : memref<1x8x256xf32, #tpu.memory_space<vmem>>, vector<1x1x256xf32>,
    %c0_344 = arith.constant 0 : index
    %c0_345 = arith.constant 0 : index
    %c7_346 = arith.constant 7 : index
    %c0_347 = arith.constant 0 : index
    %c0_348 = arith.constant 0 : index
    %592 = vector.load %arg4[%c0_344, %c0_345, %c7_346, %c0_347, %c0_348] : memref<1x1x8x8x9xf32, #tpu.memory_space<vmem>>, vector<1x1x1x8x9xf32>
    %593 = vector.shape_cast %592 : vector<1x1x1x8x9xf32> to vector<8x9xf32>
    %cst_349 = arith.constant 0xFF800000 : f32
    %594 = vector.broadcast %cst_349 : f32 to vector<8x256xf32>
    %c0_350 = arith.constant 0 : index
    %c0_351 = arith.constant 0 : index
    %c0_352 = arith.constant 0 : index
    %595 = vector.load %arg8[%c0_350, %c0_351, %c0_352] : memref<9x8x256xf32, #tpu.memory_space<vmem>>, vector<1x8x256xf32>
    %596 = vector.shape_cast %595 : vector<1x8x256xf32> to vector<8x256xf32>
    %597 = vector.extract_strided_slice %593 {offsets = [0, 0], sizes = [8, 1], strides = [1, 1]} : vector<8x9xf32> to vector<8x1xf32>
    %598 = vector.broadcast %597 : vector<8x1xf32> to vector<8x256xf32>
    %599 = arith.addf %596, %598 : vector<8x256xf32>
    %600 = arith.maximumf %594, %599 : vector<8x256xf32>
    %c1_353 = arith.constant 1 : index
    %c0_354 = arith.constant 0 : index
    %c0_355 = arith.constant 0 : index
    %601 = vector.load %arg8[%c1_353, %c0_354, %c0_355] : memref<9x8x256xf32, #tpu.memory_space<vmem>>, vector<1x8x256xf32>
    %602 = vector.shape_cast %601 : vector<1x8x256xf32> to vector<8x256xf32>
    %603 = vector.extract_strided_slice %593 {offsets = [0, 1], sizes = [8, 1], strides = [1, 1]} : vector<8x9xf32> to vector<8x1xf32>
    %604 = vector.broadcast %603 : vector<8x1xf32> to vector<8x256xf32>
    %605 = arith.addf %602, %604 : vector<8x256xf32>
    %606 = arith.maximumf %600, %605 : vector<8x256xf32>
    %c2_356 = arith.constant 2 : index
    %c0_357 = arith.constant 0 : index
    %c0_358 = arith.constant 0 : index
    %607 = vector.load %arg8[%c2_356, %c0_357, %c0_358] : memref<9x8x256xf32, #tpu.memory_space<vmem>>, vector<1x8x256xf32>
    %608 = vector.shape_cast %607 : vector<1x8x256xf32> to vector<8x256xf32>
    %609 = vector.extract_strided_slice %593 {offsets = [0, 2], sizes = [8, 1], strides = [1, 1]} : vector<8x9xf32> to vector<8x1xf32>
    %610 = vector.broadcast %609 : vector<8x1xf32> to vector<8x256xf32>
    %611 = arith.addf %608, %610 : vector<8x256xf32>
    %612 = arith.maximumf %606, %611 : vector<8x256xf32>
    %c3_359 = arith.constant 3 : index
    %c0_360 = arith.constant 0 : index
    %c0_361 = arith.constant 0 : index
    %613 = vector.load %arg8[%c3_359, %c0_360, %c0_361] : memref<9x8x256xf32, #tpu.memory_space<vmem>>, vector<1x8x256xf32>
    %614 = vector.shape_cast %613 : vector<1x8x256xf32> to vector<8x256xf32>
    %615 = vector.extract_strided_slice %593 {offsets = [0, 3], sizes = [8, 1], strides = [1, 1]} : vector<8x9xf32> to vector<8x1xf32>
    %616 = vector.broadcast %615 : vector<8x1xf32> to vector<8x256xf32>
    %617 = arith.addf %614, %616 : vector<8x256xf32>
    %618 = arith.maximumf %612, %617 : vector<8x256xf32>
    %c4_362 = arith.constant 4 : index
    %c0_363 = arith.constant 0 : index
    %c0_364 = arith.constant 0 : index
    %619 = vector.load %arg8[%c4_362, %c0_363, %c0_364] : memref<9x8x256xf32, #tpu.memory_space<vmem>>, vector<1x8x256xf32>
    %620 = vector.shape_cast %619 : vector<1x8x256xf32> to vector<8x256xf32>
    %621 = vector.extract_strided_slice %593 {offsets = [0, 4], sizes = [8, 1], strides = [1, 1]} : vector<8x9xf32> to vector<8x1xf32>
    %622 = vector.broadcast %621 : vector<8x1xf32> to vector<8x256xf32>
    %623 = arith.addf %620, %622 : vector<8x256xf32>
    %624 = arith.maximumf %618, %623 : vector<8x256xf32>
    %c5_365 = arith.constant 5 : index
    %c0_366 = arith.constant 0 : index
    %c0_367 = arith.constant 0 : index
    %625 = vector.load %arg8[%c5_365, %c0_366, %c0_367] : memref<9x8x256xf32, #tpu.memory_space<vmem>>, vector<1x8x256xf32>
    %626 = vector.shape_cast %625 : vector<1x8x256xf32> to vector<8x256xf32>
    %627 = vector.extract_strided_slice %593 {offsets = [0, 5], sizes = [8, 1], strides = [1, 1]} : vector<8x9xf32> to vector<8x1xf32>
    %628 = vector.broadcast %627 : vector<8x1xf32> to vector<8x256xf32>
    %629 = arith.addf %626, %628 : vector<8x256xf32>
    %630 = arith.maximumf %624, %629 : vector<8x256xf32>
    %c6_368 = arith.constant 6 : index
    %c0_369 = arith.constant 0 : index
    %c0_370 = arith.constant 0 : index
    %631 = vector.load %arg8[%c6_368, %c0_369, %c0_370] : memref<9x8x256xf32, #tpu.memory_space<vmem>>, vector<1x8x256xf32>
    %632 = vector.shape_cast %631 : vector<1x8x256xf32> to vector<8x256xf32>
    %633 = vector.extract_strided_slice %593 {offsets = [0, 6], sizes = [8, 1], strides = [1, 1]} : vector<8x9xf32> to vector<8x1xf32>
    %634 = vector.broadcast %633 : vector<8x1xf32> to vector<8x256xf32>
    %635 = arith.addf %632, %634 : vector<8x256xf32>
    %636 = arith.maximumf %630, %635 : vector<8x256xf32>
    %c7_371 = arith.constant 7 : index
    %c0_372 = arith.constant 0 : index
    %c0_373 = arith.constant 0 : index
    %637 = vector.load %arg8[%c7_371, %c0_372, %c0_373] : memref<9x8x256xf32, #tpu.memory_space<vmem>>, vector<1x8x256xf32>
    %638 = vector.shape_cast %637 : vector<1x8x256xf32> to vector<8x256xf32>
    %639 = vector.extract_strided_slice %593 {offsets = [0, 7], sizes = [8, 1], strides = [1, 1]} : vector<8x9xf32> to vector<8x1xf32>
    %640 = vector.broadcast %639 : vector<8x1xf32> to vector<8x256xf32>
    %641 = arith.addf %638, %640 : vector<8x256xf32>
    %642 = arith.maximumf %636, %641 : vector<8x256xf32>
    %c8_374 = arith.constant 8 : index
    %c0_375 = arith.constant 0 : index
    %c0_376 = arith.constant 0 : index
    %643 = vector.load %arg8[%c8_374, %c0_375, %c0_376] : memref<9x8x256xf32, #tpu.memory_space<vmem>>, vector<1x8x256xf32>
    %644 = vector.shape_cast %643 : vector<1x8x256xf32> to vector<8x256xf32>
    %645 = vector.extract_strided_slice %593 {offsets = [0, 8], sizes = [8, 1], strides = [1, 1]} : vector<8x9xf32> to vector<8x1xf32>
    %646 = vector.broadcast %645 : vector<8x1xf32> to vector<8x256xf32>
    %647 = arith.addf %644, %646 : vector<8x256xf32>
    %648 = arith.maximumf %642, %647 : vector<8x256xf32>
    %cst_377 = arith.constant 0.000000e+00 : f32
    %649 = vector.shape_cast %108 : vector<8x1xi1> to vector<8x1xi1>
    %650 = vector.broadcast %649 : vector<8x1xi1> to vector<8x256xi1>
    %651 = vector.broadcast %cst_377 : f32 to vector<8x256xf32>
    %652 = arith.select %650, %648, %651 : vector<8x256xi1>, vector<8x256xf32>
    %cst_378 = arith.constant dense<0.000000e+00> : vector<256xf32>
    %653 = vector.multi_reduction <add>, %652, %cst_378 [0] : vector<8x256xf32> to vector<256xf32>
    %654 = vector.shape_cast %653 : vector<256xf32> to vector<1x256xf32>
    %c0_379 = arith.constant 0 : index
    %c7_380 = arith.constant 7 : index
    %c0_381 = arith.constant 0 : index
    %655 = vector.load %arg7[%c0_379, %c7_380, %c0_381] : memref<1x8x256xf32, #tpu.memory_space<vmem>>, vector<1x1x256xf32>
    %656 = vector.shape_cast %655 : vector<1x1x256xf32> to vector<1x256xf32>
    %657 = arith.addf %656, %654 : vector<1x256xf32>
    %c0_382 = arith.constant 0 : index
    %c7_383 = arith.constant 7 : index
    %c0_384 = arith.constant 0 : index
    %658 = vector.load %arg7[%c0_382, %c7_383, %c0_384] : memref<1x8x256xf32, #tpu.memory_space<vmem>>, vector<1x1x256xf32>
    %659 = vector.shape_cast %658 : vector<1x1x256xf32> to vector<1x256xf32>
    %660 = vector.shape_cast %657 : vector<1x256xf32> to vector<1x1x256xf32>
    tpu.vector_store %arg7[%c0_382, %c7_383, %c0_384], %660 {strides = array<i32>} : memref<1x8x256xf32, #tpu.memory_space<vmem>>, vector<1x1x256xf32>,
    return
  }
  func.func @transform_0(%arg0: i32, %arg1: i32, %arg2: i32) -> (i32, i32, i32) {
    %c0_i32 = arith.constant 0 : i32
    %c0_i32_0 = arith.constant 0 : i32
    return %arg0, %arg2, %c0_i32 : i32, i32, i32
  }
  func.func @transform_1(%arg0: i32, %arg1: i32, %arg2: i32) -> (i32, i32, i32, i32, i32) {
    %c0_i32 = arith.constant 0 : i32
    %c0_i32_0 = arith.constant 0 : i32
    %c0_i32_1 = arith.constant 0 : i32
    %c0_i32_2 = arith.constant 0 : i32
    return %arg1, %arg2, %c0_i32, %c0_i32_0, %c0_i32_1 : i32, i32, i32, i32, i32
  }
  func.func @transform_2(%arg0: i32, %arg1: i32, %arg2: i32) -> (i32, i32, i32) {
    %c0_i32 = arith.constant 0 : i32
    %c0_i32_0 = arith.constant 0 : i32
    %c0_i32_1 = arith.constant 0 : i32
    return %arg1, %c0_i32, %c0_i32_0 : i32, i32, i32
  }
  func.func @transform_3(%arg0: i32, %arg1: i32, %arg2: i32) -> (i32, i32) {
    %c0_i32 = arith.constant 0 : i32
    %c0_i32_0 = arith.constant 0 : i32
    %c0_i32_1 = arith.constant 0 : i32
    return %c0_i32, %c0_i32_0 : i32, i32
  }
  func.func @transform_4(%arg0: i32, %arg1: i32, %arg2: i32) -> (i32, i32, i32) {
    %c0_i32 = arith.constant 0 : i32
    %c0_i32_0 = arith.constant 0 : i32
    return %arg0, %arg1, %c0_i32 : i32, i32, i32
  }
}

</mosaic_0001>

<bundles_post_ra>
// kernel: tpu_custom_call.1
= control target key start
LH: loop header
LB: loop body
LE: loop exit
PB: predicated region body
PF: predicated region fallthrough
CT: control target
= control target key end

     0   :  { %9 = vsyncpa [#allocation4], 0  ;;  %s3111_s0 = inlined_call_operand.hbm [shape: f32[2,8,256], index: 0, kind: input, shape index: {}]   ;;  %s3112_s1 = inlined_call_operand.hbm [shape: f32[1,1,8,8,9], index: 1, kind: input, shape index: {}]   ;;  %s3113_s2 = inlined_call_operand.vmem [shape: f32[1,8,1], index: 2, kind: input, shape index: {}]   ;;  %s3114_s3 = inlined_call_operand.hbm [shape: s32[9,256], index: 3, kind: input, shape index: {}]   ;;  %s3115_s4 = inlined_call_operand.hbm [shape: f32[2,8,256], index: 4, kind: output, shape index: {}]  }
   0x1   :  { %11 = vsyncpa [#allocation4 + $0x1], 0 }
   0x2   :  { %12 = vsyncpa [#allocation7], 0 }
   0x3   :  { %13 = vsyncpa [#allocation5], 0 }
   0x4   :  { %15 = vsyncpa [#allocation5 + $0x1], 0  ;;  %s2121_s15 = smov 0   ;;  %s2123_s16 = smov 0  }
   0x5   :  { %s2125_s17 = smov 0   ;;  %s2127_s18 = smov 0  }
   0x6   :  { %s2129_s19 = smov 0   ;;  %s2131_s20 = smov 0  }
   0x7 LB: > { %s1715_s21 = sadd.s32 4294967295, %s2068_s20   ;;  %s1716_s22 = sadd.s32 4294967294, %s2068_s20   ;;  %s2068_s20 = sphi %s2131_s20, %s21_s20   ;;  %s2064_s19 = sphi %s2129_s19, %s3225_s19   ;;  %s2060_s18 = sphi %s2127_s18, %s3224_s18   ;;  %s2056_s17 = sphi %s2125_s17, %s3223_s17   ;;  %s2052_s16 = sphi %s2123_s16, %s3222_s16   ;;  %s2048_s15 = sphi %s2121_s15, %s3221_s15  }
   0x8   : > { %p62_p0 = scmp.ne.s32.totalorder %s2052_s16, %s2048_s15  ;;  %p2155_p1 = scmp.eq.s32.totalorder %s1715_s21, 0 }
   0x9   : > { %p2159_p2 = scmp.eq.s32.totalorder %s1715_s21, 1  ;;  %p169_p3 = scmp.eq.s32.totalorder %s1716_s22, 1 }
   0xa   : > { %s3135_s23 = scalar_select %p2155_p1, 1, 0 }
   0xb   : > { %p2165_p4 = por %p2155_p1, %p62_p0  ;;  %p1717_p5 = scmp.ge.s32.totalorder %s2068_s20, 1 }
   0xc   : > { %p2170_p6 = por %p169_p3, %p62_p0  ;;  %p176_p7 = scmp.lt.s32.totalorder %s2068_s20, 3 }
   0xd   : > { %s3137_s25 = scalar_select %p2165_p4, 1, 0 }
   0xe   : > { %s3138_s26 = scalar_select %p2170_p6, 1, 0 }
   0xf   : > { %p2175_p8 = pnand %p1717_p5, %p176_p7  ;;  %s2070_s28 = smov [#allocation6]  }
  0x10   : > { %s193_s29 = sshll.u32 %s2070_s28, 4  ;;  %s2071_s5 = smov [#allocation8]   ;;  %s194_s29 = int_to_ptr.vmem [resolvable:$true] %s193_s29 }
  0x11   : > { %p1763_p9 = pneg %p2175_p8  ;;  %s213_s6 = sshll.u32 %s2071_s5, 4  ;;  %s214_s6 = int_to_ptr.vmem [resolvable:$true] %s213_s6 }
  0x12   : > { %s1915_s7 = scalar_lea.vmem %s194_s29, 1024  ;;  %p1923_p5 = scmp.lt.s32.totalorder %s194_s29, %s194_s29 }
  0x13   : > { %p2184_p11 = pnand %p1763_p9, %p2155_p1  ;;  %p1916_p13 = scmp.ne.s32.totalorder %s194_s29, %s1915_s7 }
  0x14   : > { %p1924_p7 = scmp.lt.s32.totalorder %s1915_s7, %s1915_s7 }
  0x15   : > { %p1906_p12 = pneg %p2184_p11 }
  0x16   : > { %p1925_p10 = por %p1924_p7, %p1923_p5 }
  0x17   : > { %p1918_p0 = pnand %p1916_p13, %p1906_p12 }
  0x19   : > { %p1919_p3 = pneg %p1918_p0 }
  0x1b   : > { %p1926_p9 = pnand %p1925_p10, %p1919_p3 }
  0x1d   : > { %1929 = shalt.err (!%p1926_p9)
}
  0x1e   : > { %s2072_s8 = smov 128   ;;  %s2073_s9 = smov 8  }
  0x1f   : > { %1766 = dma.hbm_to_vmem [thread:$0]  (!%p2184_p11), %s3112_s1, 1024, %s194_s29, [#allocation7], %s2072_s8, %s2072_s8, %s2073_s9  }
  0x20   : > { %s1941_s12 = scalar_lea.vmem %s214_s6, 512  ;;  %p1949_p1 = scmp.lt.s32.totalorder %s214_s6, %s214_s6 }
  0x21   : > { %p1942_p6 = scmp.ne.s32.totalorder %s214_s6, %s1941_s12  ;;  %p1950_p4 = scmp.lt.s32.totalorder %s1941_s12, %s1941_s12 }
  0x23   : > { %p1944_p13 = pnand %p1942_p6, %p1906_p12  ;;  %p1951_p5 = por %p1950_p4, %p1949_p1 }
  0x25   : > { %p1945_p0 = pneg %p1944_p13 }
  0x27   : > { %p1952_p10 = pnand %p1951_p5, %p1945_p0 }
  0x29   : > { %1955 = shalt.err (!%p1952_p10)
}
  0x2a   : > { %s2074_s13 = smov 256   ;;  %s2075_s14 = smov 16  }
  0x2b   : > { %1769 = dma.hbm_to_vmem [thread:$0]  (!%p2184_p11), %s3114_s3, 512, %s214_s6, [#allocation7], %s2074_s13, %s2074_s13, %s2075_s14  }
  0x2c   : > { %s40_s28 = sadd.s32 1, %s2064_s19  ;;  %s49_s29 = sadd.s32 1, %s2056_s17 }
  0x2d   : > { %p42_p1 = scmp.ge.s32.totalorder %s40_s28, 2  ;;  %p56_p4 = scmp.ne.s32.totalorder %s2056_s17, %s2052_s16 }
  0x2e   : > { %p57_p6 = scmp.eq.s32.totalorder %s2068_s20, 0  ;;  %p1780_p12 = scmp.lt.s32.totalorder %s2068_s20, 2 }
  0x2f   : > { %s3227_s28 = smov (%p42_p1, %s40_s28), 0  ;;  %p2216_p7 = por %p2159_p2, %p56_p4 }
  0x30   : > { %p58_p3 = por %p57_p6, %p56_p4  ;;  %s44_s30 = ssub.s32 %s2064_s19, %s3227_s28 }
  0x31   : > { %s227_s7 = sand.u32 1, %s2056_s17   ;;  %p47_p9 = scmp.eq.s32.totalorder %s44_s30, 0 }
  0x32   : > { %s1722_s6 = sshll.u32 %s227_s7, 4  ;;  %s1749_s8 = sshll.u32 %s2064_s19, 8 }
  0x33   : > { %s2225_s9 = scalar_select %p47_p9, %s2056_s17, %s49_s29  }
  0x34   : > { %s239_s12 = scalar_lea.hbm %s3111_s0, %s1749_s8  ;;  %s231_s13 = scalar_lea.vmem [#allocation3], %s1722_s6 }
  0x35   : > { %s241_s14 = sshll.u32 %s231_s13, 4  ;;  %p2232_p11 = pnand %p1780_p12, %p58_p3  ;;  %s242_s14 = int_to_ptr.vmem [resolvable:$true] %s241_s14 }
  0x36   : > { %s228_s21 = scalar_lea.sflag [#allocation4], %s227_s7  ;;  %s1969_s22 = scalar_lea.vmem %s242_s14, 256 }
  0x37   : > { %p1958_p2 = pneg %p2232_p11  ;;  %p1970_p13 = scmp.ne.s32.totalorder %s242_s14, %s1969_s22 }
  0x38   : > { %s2076_s29 = smov [#allocation3]  }
  0x39   : > { %p1972_p0 = pnand %p1970_p13, %p1958_p2  ;;  %s1974_s30 = sshll.u32 %s2076_s29, 4  ;;  %s1975_s30 = int_to_ptr.vmem [resolvable:$false] %s1974_s30 }
  0x3a   : > { %s1976_s8 = scalar_lea.vmem %s1975_s30, 512  ;;  %p1977_p10 = scmp.lt.s32.totalorder %s242_s14, %s1975_s30 }
  0x3b   : > { %p1973_p5 = pneg %p1972_p0  ;;  %p1978_p1 = scmp.lt.s32.totalorder %s1976_s8, %s1969_s22 }
  0x3d   : > { %p1979_p4 = por %p1978_p1, %p1977_p10 }
  0x3f   : > { %p1980_p6 = pnand %p1979_p4, %p1973_p5 }
  0x41   : > { %1983 = shalt.err (!%p1980_p6)
}
  0x42   : > { %1773 = dma.hbm_to_vmem [thread:$0]  (!%p2232_p11), %s239_s12, 256, %s242_s14, %s228_s21  }
  0x43   : > { %250 = sbr.rel (%p2175_p8) target bundleno = 501 (0x1f5), region = 36 }
  0x48   : > { %s2243_s7 = sand.u32 1, %s2052_s16   ;;  %p3143_p12 = scmp.ne.s32.totalorder %s3137_s25, 0 }
  0x49   : > { %s1726_s6 = sshll.u32 %s2243_s7, 4  ;;  %s253_s10 = scalar_lea.sflag [#allocation4], %s2243_s7 }
  0x4a   : > { %s256_s11 = scalar_lea.vmem [#allocation3], %s1726_s6 }
  0x4b   : > { %2035 = dma.done.wait (%p3143_p12), %s253_s10, 256  }
  0x4c   : > { %2037 = vsyncadd (%p3143_p12), %s253_s10, 4294967040  ;;  %p3144_p3 = scmp.ne.s32.totalorder %s3135_s23, 0 }
  0x4e   : > { %2039 = dma.done.wait (%p3144_p3), [#allocation7], 1536  }
  0x4f   : > { %2041 = vsyncadd (%p3144_p3), [#allocation7], 4294965760  ;;  %v2077_v0 = vmov 1   ;;  %v2078_v1 = vmov 0   ;;  %v2259_v2 = vld [vmem:[%s256_s11 + $0x8] sm:$0xff]  ;;  %v2261_v3 = vld [vmem:[%s256_s11] sm:$0xff]  ;;  %v3119_v50 = vlaneseq }
  0x50   : > { %1857 = vset.pattern.permute.xlu0 %v2077_v0  ;;  %1856 = vset.pattern.permute.xlu1 %v2078_v1  ;;  %s2079_s27 = smov 17   ;;  %s2080_s25 = smov 16   ;;  %v2279_v4 = vld [vmem:[#allocation6] sm:$0xff]  ;;  %v2283_v5 = vld [vmem:[#allocation6 + $0x8] sm:$0xff]  ;;  %v2087_v6 = vmov 2   ;;  %v2288_v7 = vld [vmem:[#allocation6 + $0x10] sm:$0xff] }
  0x51   : > { %313 = vrot.lane.b32.xlu1 %v2259_v2, %s2079_s27  ;;  %311 = vrot.lane.b32.xlu0 %v2261_v3, %s2079_s27  ;;  %s2081_s23 = smov 15   ;;  %s2082_s12 = smov 1   ;;  %v3125_v8 = vmov 3   ;;  %v2292_v9 = vld [vmem:[#allocation6 + $0x18] sm:$0xff]  ;;  %v2296_v10 = vld [vmem:[#allocation6 + $0x20] sm:$0xff]  ;;  %v3123_v11 = vmov 5  }
  0x52   : > { %s2083_s13 = smov 127   ;;  %s2084_s14 = smov 113   ;;  %v2301_v12 = vld [vmem:[#allocation6 + $0x28] sm:$0xff]  ;;  %v3122_v13 = vmov 6   ;;  %v301_v14 = vld [vmem:[%s3113_s2] sm:$0xff]  ;;  %v3120_v15 = vmov 8  }
  0x53   : > { %s2085_s24 = smov 112   ;;  %s2086_s21 = smov 111   ;;  %v2312_v16 = vld [vmem:[#allocation6 + $0x38] sm:$0xff]  ;;  %v2317_v17 = vld [vmem:[#allocation6 + $0x30] sm:$0xff]  ;;  %v3124_v18 = vmov 4   ;;  %v3121_v19 = vmov 7  }
  0x54   : > { %s2447_s30 = scalar_lea.vmem [#allocation9], %s1726_s6  ;;  %v320_v52 = vld [vmem:[#allocation8] ss:$8 sm:$0x3]  ;;  %v2459_v53 = vshrl.u32 %v3119_v50, 7  ;;  %s1750_s8 = sshll.u32 %s2060_s18, 8 }
  0x55   : > { %337 = vrot.lane.b32.xlu1 %v2261_v3, %s2080_s25  ;;  %339 = vrot.lane.b32.xlu0 %v2259_v2, %s2080_s25  ;;  %v345_v54 = vld [vmem:[#allocation8 + $0x1] ss:$8 sm:$0x3]  ;;  %v371_v56 = vld [vmem:[#allocation8 + $0x2] ss:$8 sm:$0x3]  ;;  %s1587_s27 = scalar_lea.hbm %s3115_s4, %s1750_s8 }
  0x56   : > { %vm321_vm0 = vcmp.ne.s32.totalorder %v320_v52, 0  ;;  %vm346_vm1 = vcmp.ne.s32.totalorder %v345_v54, 0  ;;  %v2468_v58 = vsub.s32 0, %v2459_v53  ;;  %v2471_v59 = vsub.s32 1, %v2459_v53  ;;  %s1589_s6 = sshll.u32 %s2447_s30, 4  ;;  %s1573_s25 = scalar_lea.sflag [#allocation5], %s2243_s7  ;;  %s1590_s6 = int_to_ptr.vmem [resolvable:$true] %s1589_s6 }
  0x57   : > { %vm372_vm2 = vcmp.ne.s32.totalorder %v371_v56, 0  ;;  %v397_v60 = vld [vmem:[#allocation8 + $0x3] ss:$8 sm:$0x3]  ;;  %v322_v61 = vsel %vm321_vm0, 1, %v2078_v1  ;;  %s2095_s18 = smov [#allocation9]  }
  0x58   : > { %v442_v62 = vld [vmem:[#allocation8 + $0x5] ss:$8 sm:$0x3]  ;;  %vm398_vm3 = vcmp.ne.s32.totalorder %v397_v60, 0 }
  0x59   : > { %363 = vrot.lane.b32.xlu1 %v2261_v3, %s2081_s23  ;;  %365 = vrot.lane.b32.xlu0 %v2259_v2, %s2081_s23  ;;  %vm443_vm4 = vcmp.ne.s32.totalorder %v442_v62, 0  ;;  %v494_v52 = vld [vmem:[#allocation8 + $0x7] ss:$8 sm:$0x3]  ;;  %s1984_s23 = scalar_lea.vmem %s1590_s6, 256 }
  0x5a   : > { %vm495_vm12 = vcmp.ne.s32.totalorder %v494_v52, 0  ;;  %p1985_p8 = scmp.ne.s32.totalorder %s1590_s6, %s1984_s23 }
  0x5b   : > { %v496_v52 = vsel %vm495_vm12, 1, %v2078_v1 }
  0x5c   : > { %p1986_p9 = pnand %p1985_p8, %p2216_p7 }
  0x5d   : > { %389 = vrot.lane.b32.xlu1 %v2261_v3, %s2082_s12  ;;  %391 = vrot.lane.b32.xlu0 %v2259_v2, %s2082_s12  ;;  %s1988_s12 = sshll.u32 %s2095_s18, 4  ;;  %s1989_s12 = int_to_ptr.vmem [resolvable:$false] %s1988_s12 }
  0x5e   : > { %p1987_p11 = pneg %p1986_p9  ;;  %p1991_p2 = scmp.lt.s32.totalorder %s1590_s6, %s1989_s12 }
  0x61   : > { %434 = vrot.lane.b32.xlu1 %v2261_v3, %s2083_s13  ;;  %436 = vrot.lane.b32.xlu0 %v2259_v2, %s2083_s13  ;;  %s1990_s13 = scalar_lea.vmem %s1989_s12, 512 }
  0x62   : > { %p1992_p13 = scmp.lt.s32.totalorder %s1990_s13, %s1984_s23 }
  0x64   : > { %p1993_p0 = por %p1992_p13, %p1991_p2 }
  0x65   : > { %460 = vrot.lane.b32.xlu1 %v2261_v3, %s2084_s14  ;;  %462 = vrot.lane.b32.xlu0 %v2259_v2, %s2084_s14 }
  0x66   : > { %p1994_p5 = pnand %p1993_p0, %p1987_p11 }
  0x69   : > { %486 = vrot.lane.b32.xlu1 %v2261_v3, %s2085_s24  ;;  %488 = vrot.lane.b32.xlu0 %v2259_v2, %s2085_s24 }
  0x6d   : > { %512 = vrot.lane.b32.xlu1 %v2261_v3, %s2086_s21  ;;  %514 = vrot.lane.b32.xlu0 %v2259_v2, %s2086_s21 }
  0x71   : > { %549 = vperm.xlu1 %1856, %v2279_v4   ;;  %557 = vperm.xlu0 %1857, %v2279_v4  }
  0x75   : > { %1858 = vset.pattern.permute.xlu1 %v2087_v6  ;;  %690 = vperm.xlu0 %1857, %v2283_v5  }
  0x76   : > { %567 = vperm.xlu1 %1858, %v2279_v4  }
  0x79   : > { %818 = vperm.xlu0 %1857, %v2288_v7  }
  0x7a   : > { %1859 = vset.pattern.permute.xlu1 %v3125_v8 }
  0x7b   : > { %577 = vperm.xlu1 %1859, %v2279_v4  }
  0x7d   : > { %946 = vperm.xlu0 %1857, %v2292_v9  }
  0x7f   : > { %1860 = vset.pattern.permute.xlu1 %v3123_v11 }
  0x80   : > { %597 = vperm.xlu1 %1860, %v2279_v4  }
  0x81   : > { %1074 = vperm.xlu0 %1857, %v2296_v10  }
  0x84   : > { %1861 = vset.pattern.permute.xlu1 %v3122_v13 }
  0x85   : > { %607 = vperm.xlu1 %1861, %v2279_v4   ;;  %1202 = vperm.xlu0 %1857, %v2301_v12  }
  0x89   : > { %1862 = vset.pattern.permute.xlu1 %v3120_v15  ;;  %1888 = vset.pattern.permute.xlu0 %v2078_v1 }
  0x8a   : > { %627 = vperm.xlu1 %1862, %v2279_v4   ;;  %304 = vperm.xlu0 %1888, %v301_v14   ;;  %v326_v14 = vrot.slane %v322_v61, %v2468_v58 }
  0x8c   : > { %vm2500_vm10 = vcmp.eq.s32.totalorder %v326_v14, 1 }
  0x8e   : > { %1863 = vset.pattern.permute.xlu1 %v2078_v1  ;;  %1450 = vperm.xlu0 %1888, %v2312_v16  }
  0x8f   : > { %682 = vperm.xlu1 %1863, %v2283_v5  }
  0x92   : > { %1891 = vset.pattern.permute.xlu0 %v2087_v6 }
  0x93   : > { %1864 = vset.pattern.permute.xlu1 %v2087_v6  ;;  %1340 = vperm.xlu0 %1891, %v2317_v17  }
  0x94   : > { %700 = vperm.xlu1 %1864, %v2283_v5  }
  0x97   : > { %1893 = vset.pattern.permute.xlu0 %v3125_v8 }
  0x98   : > { %1865 = vset.pattern.permute.xlu1 %v3125_v8  ;;  %1350 = vperm.xlu0 %1893, %v2317_v17  }
  0x99   : > { %710 = vperm.xlu1 %1865, %v2283_v5  }
  0x9c   : > { %1894 = vset.pattern.permute.xlu0 %v3124_v18 }
  0x9d   : > { %1866 = vset.pattern.permute.xlu1 %v3123_v11  ;;  %587 = vperm.xlu0 %1894, %v2279_v4  }
  0x9e   : > { %730 = vperm.xlu1 %1866, %v2283_v5  }
  0xa1   : > { %720 = vperm.xlu0 %1894, %v2283_v5  }
  0xa2   : > { %1867 = vset.pattern.permute.xlu1 %v3122_v13 }
  0xa3   : > { %740 = vperm.xlu1 %1867, %v2283_v5  }
  0xa5   : > { %848 = vperm.xlu0 %1894, %v2288_v7  }
  0xa7   : > { %1868 = vset.pattern.permute.xlu1 %v3120_v15 }
  0xa8   : > { %760 = vperm.xlu1 %1868, %v2283_v5  }
  0xa9   : > { %976 = vperm.xlu0 %1894, %v2292_v9  }
  0xac   : > { %1869 = vset.pattern.permute.xlu1 %v2078_v1 }
  0xad   : > { %810 = vperm.xlu1 %1869, %v2288_v7   ;;  %1104 = vperm.xlu0 %1894, %v2296_v10  }
  0xb1   : > { %1870 = vset.pattern.permute.xlu1 %v2087_v6  ;;  %1360 = vperm.xlu0 %1894, %v2317_v17  }
  0xb2   : > { %828 = vperm.xlu1 %1870, %v2288_v7  }
  0xb5   : > { %1897 = vset.pattern.permute.xlu0 %v3123_v11 }
  0xb6   : > { %1871 = vset.pattern.permute.xlu1 %v3125_v8  ;;  %1370 = vperm.xlu0 %1897, %v2317_v17  }
  0xb7   : > { %838 = vperm.xlu1 %1871, %v2288_v7  }
  0xba   : > { %1899 = vset.pattern.permute.xlu0 %v3122_v13 }
  0xbb   : > { %1872 = vset.pattern.permute.xlu1 %v3123_v11  ;;  %1380 = vperm.xlu0 %1899, %v2317_v17  }
  0xbc   : > { %858 = vperm.xlu1 %1872, %v2288_v7  }
  0xbf   : > { %1900 = vset.pattern.permute.xlu0 %v3121_v19 }
  0xc0   : > { %1873 = vset.pattern.permute.xlu1 %v3122_v13  ;;  %617 = vperm.xlu0 %1900, %v2279_v4   ;;  %v468_v4 = vld [vmem:[#allocation8 + $0x6] ss:$8 sm:$0x3] }
  0xc1   : > { %868 = vperm.xlu1 %1873, %v2288_v7   ;;  %vm469_vm5 = vcmp.ne.s32.totalorder %v468_v4, 0 }
  0xc3   : > { %v2356_v20 = vpop.permute.xlu1 %313  ;;  %v2358_v21 = vpop.permute.xlu0 %311 }
  0xc4   : > { %750 = vperm.xlu0 %1900, %v2283_v5  }
  0xc5   : > { %1874 = vset.pattern.permute.xlu1 %v3120_v15 }
  0xc6   : > { %888 = vperm.xlu1 %1874, %v2288_v7  }
  0xc7   : > { %v2363_v22 = vpop.permute.xlu1 %337  ;;  %v2365_v23 = vpop.permute.xlu0 %339 }
  0xc8   : > { %878 = vperm.xlu0 %1900, %v2288_v7   ;;  %v2481_v7 = vand.u32 127, %v3119_v50  ;;  %v399_v50 = vsel %vm398_vm3, 1, %v2078_v1 }
  0xc9   : > { %v403_v18 = vrot.slane %v399_v50, %v2468_v58  ;;  %v407_v14 = vrot.slane %v399_v50, %v2471_v59 }
  0xca   : > { %1875 = vset.pattern.permute.xlu1 %v2078_v1  ;;  %vm317_vm7 = vcmp.lt.s32.totalorder %v2481_v7, 17  ;;  %vm341_vm8 = vcmp.lt.s32.totalorder %v2481_v7, 16 }
  0xcb   : > { %938 = vperm.xlu1 %1875, %v2292_v9   ;;  %v2370_v24 = vpop.permute.xlu1 %363  ;;  %v2372_v25 = vpop.permute.xlu0 %365 }
  0xcc   : > { %1006 = vperm.xlu0 %1900, %v2292_v9  }
  0xcf   : > { %1876 = vset.pattern.permute.xlu1 %v2087_v6  ;;  %v2376_v26 = vpop.permute.xlu1 %389  ;;  %v2378_v27 = vpop.permute.xlu0 %391 }
  0xd0   : > { %956 = vperm.xlu1 %1876, %v2292_v9   ;;  %1134 = vperm.xlu0 %1900, %v2296_v10  }
  0xd3   : > { %v2385_v28 = vpop.permute.xlu1 %434  ;;  %v2387_v29 = vpop.permute.xlu0 %436 }
  0xd4   : > { %1877 = vset.pattern.permute.xlu1 %v3125_v8  ;;  %1390 = vperm.xlu0 %1900, %v2317_v17  }
  0xd5   : > { %966 = vperm.xlu1 %1877, %v2292_v9  }
  0xd7   : > { %v2393_v30 = vpop.permute.xlu1 %460  ;;  %v2395_v31 = vpop.permute.xlu0 %462 }
  0xd8   : > { %1903 = vset.pattern.permute.xlu0 %v3120_v15 }
  0xd9   : > { %1878 = vset.pattern.permute.xlu1 %v3123_v11  ;;  %1400 = vperm.xlu0 %1903, %v2317_v17  }
  0xda   : > { %986 = vperm.xlu1 %1878, %v2292_v9  }
  0xdb   : > { %v2399_v32 = vpop.permute.xlu1 %486  ;;  %v2401_v33 = vpop.permute.xlu0 %488 }
  0xde   : > { %1879 = vset.pattern.permute.xlu1 %v3122_v13 }
  0xdf   : > { %996 = vperm.xlu1 %1879, %v2292_v9   ;;  %v2405_v34 = vpop.permute.xlu1 %512  ;;  %v2407_v35 = vpop.permute.xlu0 %514 }
  0xe3   : > { %1880 = vset.pattern.permute.xlu1 %v3120_v15 }
  0xe4   : > { %1016 = vperm.xlu1 %1880, %v2292_v9   ;;  %v373_v9 = vsel %vm372_vm2, 1, %v2078_v1 }
  0xe5   : > { %v377_v56 = vrot.slane %v373_v9, %v2468_v58  ;;  %v381_v19 = vrot.slane %v373_v9, %v2471_v59 }
  0xe7   : > { %vm2523_vm0 = vcmp.eq.s32.totalorder %v377_v56, 1  ;;  %vm2537_vm3 = vcmp.eq.s32.totalorder %v381_v19, 1  ;;  %v500_v19 = vrot.slane %v496_v52, %v2468_v58 }
  0xe8   : > { %1881 = vset.pattern.permute.xlu1 %v2078_v1 }
  0xe9   : > { %1066 = vperm.xlu1 %1881, %v2296_v10  }
  0xec   : > { %v2411_v36 = vpop.permute.xlu1 %549  ;;  %v2413_v37 = vpop.permute.xlu0 %557 }
  0xed   : > { %1882 = vset.pattern.permute.xlu1 %v2087_v6 }
  0xee   : > { %1084 = vperm.xlu1 %1882, %v2296_v10  }
  0xf0   : > { %v2417_v38 = vpop.permute.xlu0 %690 }
  0xf1   : > { %v2419_v39 = vpop.permute.xlu1 %567 }
  0xf2   : > { %1883 = vset.pattern.permute.xlu1 %v3125_v8 }
  0xf3   : > { %1094 = vperm.xlu1 %1883, %v2296_v10  }
  0xf4   : > { %v2423_v40 = vpop.permute.xlu0 %818 }
  0xf6   : > { %v2425_v41 = vpop.permute.xlu1 %577 }
  0xf7   : > { %1884 = vset.pattern.permute.xlu1 %v3123_v11 }
  0xf8   : > { %1114 = vperm.xlu1 %1884, %v2296_v10   ;;  %v2429_v42 = vpop.permute.xlu0 %946 }
  0xf9   : > { %3145 = vst [vmem:[#allocation13_spill] sm:$0xff] %v2429_v42  ;;  %v3172_v42 = vmov 0 }
  0xfb   : > { %v2431_v43 = vpop.permute.xlu1 %597 }
  0xfc   : > { %1885 = vset.pattern.permute.xlu1 %v3122_v13  ;;  %v2434_v44 = vpop.permute.xlu0 %1074  ;;  %v470_v13 = vsel %vm469_vm5, 1, %v2078_v1  ;;  %vm2552_vm5 = vcmp.eq.s32.totalorder %v407_v14, 1  ;;  %v3170_v14 = vmov 0 }
  0xfd   : > { %3146 = vst [vmem:[#allocation14_spill] sm:$0xff] %v2434_v44  ;;  %1124 = vperm.xlu1 %1885, %v2296_v10  }
 0x100   : > { %v2437_v45 = vpop.permute.xlu1 %607  ;;  %v2439_v46 = vpop.permute.xlu0 %1202 }
 0x101   : > { %3147 = vst [vmem:[#allocation15_spill] sm:$0xff] %v2439_v46  ;;  %1886 = vset.pattern.permute.xlu1 %v3120_v15  ;;  %v520_v15 = vld [vmem:[#allocation8 + $0x10] ss:$8 sm:$0x3] }
 0x102   : > { %1144 = vperm.xlu1 %1886, %v2296_v10   ;;  %v416_v10 = vld [vmem:[#allocation8 + $0x4] ss:$8 sm:$0x3]  ;;  %vm521_vm14 = vcmp.ne.s32.totalorder %v520_v15, 0 }
 0x103   : > { %vm417_vm6 = vcmp.ne.s32.totalorder %v416_v10, 0  ;;  %v474_v10 = vrot.slane %v470_v13, %v2468_v58  ;;  %v2542_v56 = vsel %vm521_vm14, 1, %v2078_v1 }
 0x105   : > { %v2443_v47 = vpop.permute.xlu1 %627  ;;  %v305_v48 = vpop.permute.xlu0 %304 }
 0x106   : > { %3148 = vst [vmem:[#allocation16_spill] sm:$0xff] %v2443_v47  ;;  %307 = vst [vmem:[%s2447_s30] sm:$0xff] %v305_v48  ;;  %1887 = vset.pattern.permute.xlu1 %v2078_v1  ;;  %v3176_v47 = vmov 3  }
 0x107   : > { %308 = vst [vmem:[%s2447_s30 + $0x8] sm:$0xff] %v305_v48  ;;  %1194 = vperm.xlu1 %1887, %v2301_v12  }
 0x109   : > { %v2453_v49 = vpop.permute.xlu0 %1450 }
 0x10a   : > { %3149 = vst [vmem:[#allocation17_spill] sm:$0xff] %v2453_v49  ;;  %v2455_v51 = vpop.permute.xlu1 %682 }
 0x10b   : > { %1322 = vperm.xlu1 %1887, %v2317_v17  }
 0x10e   : > { %v2461_v55 = vpop.permute.xlu0 %1340 }
 0x10f   : > { %3150 = vst [vmem:[#allocation18_spill] sm:$0xff] %v2461_v55  ;;  %1889 = vset.pattern.permute.xlu1 %v2077_v0  ;;  %v2464_v57 = vpop.permute.xlu1 %700  ;;  %v347_v0 = vsel %vm346_vm1, 1, %v2078_v1 }
 0x110   : > { %1330 = vperm.xlu1 %1889, %v2317_v17   ;;  %v330_v17 = vrot.slane %v322_v61, %v2471_v59  ;;  %v351_v48 = vrot.slane %v347_v0, %v2468_v58  ;;  %v355_v54 = vrot.slane %v347_v0, %v2471_v59  ;;  %v444_v61 = vsel %vm443_vm4, 1, %v2078_v1 }
 0x111   : > { %v448_v9 = vrot.slane %v444_v61, %v2468_v58  ;;  %v452_v50 = vrot.slane %v444_v61, %v2471_v59  ;;  %vm2548_vm4 = vcmp.eq.s32.totalorder %v403_v18, 1  ;;  %v2094_v18 = vmov 1966171168  }
 0x112   : > { %vm2504_vm11 = vcmp.eq.s32.totalorder %v330_v17, 1  ;;  %vm2511_vm13 = vcmp.eq.s32.totalorder %v351_v48, 1  ;;  %v418_v17 = vsel %vm417_vm6, 1, %v2078_v1  ;;  %vm2519_vm15 = vcmp.eq.s32.totalorder %v355_v54, 1 }
 0x113   : > { %v2474_v63 = vpop.permute.xlu0 %1350  ;;  %v478_v48 = vrot.slane %v470_v13, %v2471_v59  ;;  %v422_v49 = vrot.slane %v418_v17, %v2468_v58  ;;  %v426_v61 = vrot.slane %v418_v17, %v2471_v59  ;;  %vm2558_vm14 = vcmp.eq.s32.totalorder %v448_v9, 1 }
 0x114   : > { %3151 = vst [vmem:[#allocation19_spill] sm:$0xff] %v2474_v63  ;;  %1458 = vperm.xlu1 %1889, %v2312_v16   ;;  %v2478_v5 = vpop.permute.xlu1 %710  ;;  %v504_v17 = vrot.slane %v496_v52, %v2471_v59  ;;  %v2564_v55 = vunpack.c.l.s4 %v2094_v18  ;;  %vm2568_vm2 = vcmp.eq.s32.totalorder %v452_v50, 1  ;;  %vm2572_vm6 = vcmp.eq.s32.totalorder %v474_v10, 1 }
 0x115   : > { %v3171_v14 = vsel %vm2568_vm2, 4294967295, %v3170_v14  ;;  %v3173_v42 = vsel %vm2572_vm6, 4294967295, %v3172_v42  ;;  %vm2576_vm12 = vcmp.eq.s32.totalorder %v478_v48, 1  ;;  %v3174_v9 = vmov 0 }
 0x116   : > { %v3175_v9 = vsel %vm2576_vm12, 4294967295, %v3174_v9  ;;  %v318_v50 = vsel %vm317_vm7, %v2358_v21, %v2356_v20  ;;  %v319_v10 = vsel %vm317_vm7, %v2356_v20, %v2358_v21  ;;  %vm427_vm1 = vcmp.eq.s32.totalorder %v422_v49, 1 }
 0x117   : > { %vm428_vm9 = vcmp.eq.s32.totalorder %v426_v61, 1  ;;  %v342_v48 = vsel %vm341_vm8, %v2363_v22, %v2365_v23  ;;  %vm3177_vm12 = vcmp.lt.s32.totalorder %v2481_v7, 15  ;;  %vm2610_vm6 = vcmp.eq.s32.totalorder %v500_v19, 1 }
 0x118   : > { %1890 = vset.pattern.permute.xlu1 %v2087_v6  ;;  %v2491_v60 = vpop.permute.xlu0 %587  ;;  %v368_v18 = vsel %vm3177_vm12, %v2370_v24, %v2372_v25  ;;  %vm3178_vm7 = vmmov %vm3177_vm12  ;;  %vm2614_vm2 = vcmp.eq.s32.totalorder %v504_v17, 1  ;;  %v2632_v19 = vsel %vm427_vm1, %v2261_v3, -inf  ;;  %v2635_v17 = vsel %vm428_vm9, %v2259_v2, -inf }
 0x119   : > { %1212 = vperm.xlu1 %1890, %v2301_v12   ;;  %v2498_v62 = vpop.permute.xlu1 %730  ;;  %v369_v20 = vsel %vm3178_vm7, %v2372_v25, %v2370_v24  ;;  %v2625_v24 = vsel %vm2500_vm10, %v319_v10, -inf  ;;  %v2629_v25 = vsel %vm2504_vm11, %v318_v50, -inf  ;;  %v2651_v6 = vsel %vm2537_vm3, %v368_v18, -inf }
 0x11a   : > { %v2647_v0 = vsel %vm2523_vm0, %v369_v20, -inf  ;;  %vm3185_vm10 = vcmp.lt.s32.totalorder %v2481_v7, 127  ;;  %vm3189_vm0 = vcmp.lt.s32.totalorder %v2481_v7, 112  ;;  %v552_v50 = vadd.f32 %v2411_v36, %v2625_v24 }
 0x11b   : > { %v439_v8 = vsel %vm3185_vm10, %v2385_v28, %v2387_v29  ;;  %vm3186_vm11 = vmmov %vm3185_vm10  ;;  %v553_v10 = vadd.f32 %v2411_v36, %v2629_v25  ;;  %vm3191_vm3 = vnez %v3171_v14  ;;  %vm516_vm12 = vcmp.lt.s32.totalorder %v2481_v7, 111 }
 0x11c   : > { %v2531_v15 = vpop.permute.xlu0 %720  ;;  %v440_v11 = vsel %vm3186_vm11, %v2387_v29, %v2385_v28  ;;  %vm3190_vm1 = vmmov %vm3189_vm0  ;;  %v571_v63 = vadd.f32 %v2419_v39, %v2651_v6  ;;  %v685_v13 = vadd.f32 %v2455_v51, %v2625_v24  ;;  %v686_v1 = vadd.f32 %v2455_v51, %v2629_v25 }
 0x11d   : > { %1468 = vperm.xlu1 %1890, %v2312_v16   ;;  %v492_v28 = vsel %vm3190_vm1, %v2401_v33, %v2399_v32  ;;  %v2710_v36 = vsel %vm3191_vm3, %v440_v11, -inf  ;;  %v703_v61 = vadd.f32 %v2464_v57, %v2647_v0 }
 0x11e   : > { %v2546_v46 = vpop.permute.xlu1 %740 }
 0x120   : > { %v2566_v44 = vpop.permute.xlu0 %848 }
 0x121   : > { %1892 = vset.pattern.permute.xlu1 %v3176_v47  ;;  %v343_v47 = vsel %vm341_vm8, %v2365_v23, %v2363_v22  ;;  %v530_v22 = vrot.slane %v2542_v56, %v2471_v59  ;;  %v2643_v23 = vsel %vm2519_vm15, %v342_v48, -inf  ;;  %vm3183_vm8 = vcmp.lt.s32.totalorder %v2481_v7, 1 }
 0x122   : > { %1222 = vperm.xlu1 %1892, %v2301_v12   ;;  %v2639_v59 = vsel %vm2511_vm13, %v343_v47, -inf  ;;  %v394_v2 = vsel %vm3183_vm8, %v2376_v26, %v2378_v27  ;;  %vm3184_vm9 = vmmov %vm3183_vm8  ;;  %vm3187_vm13 = vcmp.lt.s32.totalorder %v2481_v7, 113  ;;  %v3192_v47 = vmov 4  }
 0x123   : > { %v2608_v21 = vpop.permute.xlu1 %760  ;;  %v395_v3 = vsel %vm3184_vm9, %v2378_v27, %v2376_v26  ;;  %v465_v4 = vsel %vm3187_vm13, %v2393_v30, %v2395_v31  ;;  %vm3188_vm15 = vmmov %vm3187_vm13  ;;  %v491_v27 = vsel %vm3189_vm0, %v2399_v32, %v2401_v33  ;;  %v2702_v32 = vsel %vm2552_vm5, %v394_v2, -inf }
 0x124   : > { %v2621_v52 = vpop.permute.xlu0 %976  ;;  %v466_v26 = vsel %vm3188_vm15, %v2395_v31, %v2393_v30  ;;  %v560_v30 = vadd.f32 %v2413_v37, %v2639_v59  ;;  %v561_v31 = vadd.f32 %v2413_v37, %v2643_v23  ;;  %v2698_v48 = vsel %vm2548_vm4, %v395_v3, -inf }
 0x125   : > { %v2706_v33 = vsel %vm2558_vm14, %v439_v8, -inf  ;;  %v570_v37 = vadd.f32 %v2419_v39, %v2647_v0  ;;  %vm3193_vm4 = vnez %v3173_v42  ;;  %vm3194_vm5 = vnez %v3175_v9 }
 0x126   : > { %1478 = vperm.xlu1 %1892, %v2312_v16   ;;  %v2725_v14 = vsel %vm3193_vm4, %v465_v4, -inf  ;;  %v2729_v18 = vsel %vm3194_vm5, %v466_v26, -inf  ;;  %v2733_v20 = vsel %vm2610_vm6, %v491_v27, -inf  ;;  %v2737_v39 = vsel %vm2614_vm2, %v492_v28, -inf }
 0x127   : > { %v562_v51 = vmax.f32 %v552_v50, %v560_v30  ;;  %v563_v3 = vmax.f32 %v553_v10, %v561_v31  ;;  %v693_v42 = vadd.f32 %v2417_v38, %v2639_v59  ;;  %v694_v9 = vadd.f32 %v2417_v38, %v2643_v23 }
 0x128   : > { %v811_v29 = vpop.permute.xlu1 %810  ;;  %v2686_v54 = vpop.permute.xlu0 %1104  ;;  %v580_v49 = vadd.f32 %v2425_v41, %v2698_v48  ;;  %v581_v11 = vadd.f32 %v2425_v41, %v2702_v32  ;;  %v704_v4 = vadd.f32 %v2464_v57, %v2651_v6  ;;  %v3196_v26 = vrot.slane %v2542_v56, %v2468_v58 }
 0x129   : > { %vm2760_vm6 = vcmp.eq.s32.totalorder %v530_v22, 1  ;;  %v572_v28 = vmax.f32 %v562_v51, %v570_v37  ;;  %v573_v50 = vmax.f32 %v563_v3, %v571_v63  ;;  %v695_v41 = vmax.f32 %v685_v13, %v693_v42 }
 0x12a   : > { %1895 = vset.pattern.permute.xlu1 %v3192_v47  ;;  %vm2756_vm2 = vcmp.eq.s32.totalorder %v3196_v26, 1  ;;  %v696_v10 = vmax.f32 %v686_v1, %v694_v9  ;;  %v713_v57 = vadd.f32 %v2478_v5, %v2698_v48  ;;  %v714_v58 = vadd.f32 %v2478_v5, %v2702_v32 }
 0x12b   : > { %1232 = vperm.xlu1 %1895, %v2301_v12   ;;  %v590_v56 = vadd.f32 %v2491_v60, %v2632_v19  ;;  %v591_v22 = vadd.f32 %v2491_v60, %v2635_v17  ;;  %v821_v30 = vadd.f32 %v2423_v40, %v2639_v59  ;;  %v822_v31 = vadd.f32 %v2423_v40, %v2643_v23 }
 0x12c   : > { %v2739_v2 = vpop.permute.xlu0 %1360  ;;  %v813_v47 = vadd.f32 %v811_v29, %v2625_v24  ;;  %v814_v37 = vadd.f32 %v811_v29, %v2629_v25  ;;  %v582_v13 = vmax.f32 %v572_v28, %v580_v49  ;;  %v583_v5 = vmax.f32 %v573_v50, %v581_v11 }
 0x12d   : > { %3195 = vst [vmem:[#allocation20_spill] sm:$0xff] %v2739_v2  ;;  %v829_v8 = vpop.permute.xlu1 %828  ;;  %v705_v1 = vmax.f32 %v695_v41, %v703_v61  ;;  %v706_v51 = vmax.f32 %v696_v10, %v704_v4  ;;  %v723_v60 = vadd.f32 %v2531_v15, %v2632_v19  ;;  %v724_v42 = vadd.f32 %v2531_v15, %v2635_v17 }
 0x12e   : > { %v831_v9 = vadd.f32 %v829_v8, %v2647_v0  ;;  %v832_v40 = vadd.f32 %v829_v8, %v2651_v6  ;;  %v3202_v26 = vmov 5   ;;  %v593_v49 = vmax.f32 %v583_v5, %v591_v22 }
 0x12f   : > { %1488 = vperm.xlu1 %1895, %v2312_v16   ;;  %v715_v29 = vmax.f32 %v705_v1, %v713_v57  ;;  %v716_v2 = vmax.f32 %v706_v51, %v714_v58  ;;  %v823_v11 = vmax.f32 %v813_v47, %v821_v30  ;;  %v824_v61 = vmax.f32 %v814_v37, %v822_v31 }
 0x130   : > { %v517_v15 = vsel %vm516_vm12, %v2405_v34, %v2407_v35  ;;  %v518_v8 = vsel %vm516_vm12, %v2407_v35, %v2405_v34  ;;  %v600_v50 = vadd.f32 %v2431_v43, %v2706_v33  ;;  %v601_v41 = vadd.f32 %v2431_v43, %v2710_v36 }
 0x131   : > { %v2779_v63 = vpop.permute.xlu0 %1370  ;;  %vm543_vm14 = vcmp.lt.s32.totalorder %v2459_v53, 4  ;;  %v725_v57 = vmax.f32 %v715_v29, %v723_v60  ;;  %v726_v58 = vmax.f32 %v716_v2, %v724_v42  ;;  %v834_v22 = vmax.f32 %v824_v61, %v832_v40 }
 0x132   : > { %3201 = vst [vmem:[#allocation21_spill] sm:$0xff] %v2779_v63  ;;  %v839_v3 = vpop.permute.xlu1 %838  ;;  %v592_v63 = vmax.f32 %v582_v13, %v590_v56  ;;  %v833_v56 = vmax.f32 %v823_v11, %v831_v9  ;;  %v603_v47 = vmax.f32 %v593_v49, %v601_v41  ;;  %v733_v34 = vadd.f32 %v2498_v62, %v2706_v33 }
 0x133   : > { %1896 = vset.pattern.permute.xlu1 %v3202_v26  ;;  %v841_v4 = vadd.f32 %v839_v3, %v2698_v48  ;;  %v842_v28 = vadd.f32 %v839_v3, %v2702_v32  ;;  %v734_v35 = vadd.f32 %v2498_v62, %v2710_v36  ;;  %v851_v43 = vadd.f32 %v2566_v44, %v2632_v19 }
 0x134   : > { %1242 = vperm.xlu1 %1896, %v2301_v12   ;;  %v602_v31 = vmax.f32 %v592_v63, %v600_v50  ;;  %v852_v7 = vadd.f32 %v2566_v44, %v2635_v17  ;;  %v2817_v63 = vsel %vm2756_vm2, %v517_v15, -inf  ;;  %v2821_v13 = vsel %vm2760_vm6, %v518_v8, -inf }
 0x135   : > { %v843_v2 = vmax.f32 %v833_v56, %v841_v4  ;;  %v844_v37 = vmax.f32 %v834_v22, %v842_v28  ;;  %v610_v62 = vadd.f32 %v2437_v45, %v2725_v14  ;;  %v611_v5 = vadd.f32 %v2437_v45, %v2729_v18 }
 0x136   : > { %v2803_v10 = vpop.permute.xlu0 %1380  ;;  %v735_v1 = vmax.f32 %v725_v57, %v733_v34  ;;  %v736_v51 = vmax.f32 %v726_v58, %v734_v35  ;;  %v743_v44 = vadd.f32 %v2546_v46, %v2725_v14  ;;  %v744_v27 = vadd.f32 %v2546_v46, %v2729_v18  ;;  %v3204_v46 = vld [vmem:[#allocation16_spill] sm:$0xff] }
 0x137   : > { %v859_v30 = vpop.permute.xlu1 %858  ;;  %v612_v60 = vmax.f32 %v602_v31, %v610_v62  ;;  %v613_v42 = vmax.f32 %v603_v47, %v611_v5  ;;  %v3203_v40 = vmov 6   ;;  %v853_v29 = vmax.f32 %v843_v2, %v851_v43 }
 0x138   : > { %1498 = vperm.xlu1 %1896, %v2312_v16   ;;  %v854_v45 = vmax.f32 %v844_v37, %v852_v7  ;;  %v861_v49 = vadd.f32 %v859_v30, %v2706_v33  ;;  %v862_v11 = vadd.f32 %v859_v30, %v2710_v36  ;;  %v630_v61 = vadd.f32 %v3204_v46, %v2817_v63 }
 0x139   : > { %v631_v4 = vadd.f32 %v3204_v46, %v2821_v13  ;;  %v745_v8 = vmax.f32 %v735_v1, %v743_v44  ;;  %v746_v50 = vmax.f32 %v736_v51, %v744_v27  ;;  %v763_v47 = vadd.f32 %v2608_v21, %v2817_v63 }
 0x13a   : > { %v764_v34 = vadd.f32 %v2608_v21, %v2821_v13  ;;  %v863_v35 = vmax.f32 %v853_v29, %v861_v49  ;;  %v864_v43 = vmax.f32 %v854_v45, %v862_v11  ;;  %v3205_v45 = vmov 7  }
 0x13b   : > { %v618_v3 = vpop.permute.xlu0 %617 }
 0x13c   : > { %v620_v38 = vadd.f32 %v618_v3, %v2733_v20  ;;  %v621_v9 = vadd.f32 %v618_v3, %v2737_v39  ;;  %1898 = vset.pattern.permute.xlu1 %v3203_v40  ;;  %v869_v26 = vpop.permute.xlu1 %868 }
 0x13d   : > { %1252 = vperm.xlu1 %1898, %v2301_v12   ;;  %v871_v41 = vadd.f32 %v869_v26, %v2725_v14  ;;  %v872_v57 = vadd.f32 %v869_v26, %v2729_v18 }
 0x13e   : > { %v622_v28 = vmax.f32 %v612_v60, %v620_v38  ;;  %v623_v15 = vmax.f32 %v613_v42, %v621_v9 }
 0x13f   : > { %v751_v58 = vpop.permute.xlu0 %750  ;;  %v873_v44 = vmax.f32 %v863_v35, %v871_v41  ;;  %v874_v27 = vmax.f32 %v864_v43, %v872_v57  ;;  %v3206_v41 = vunpack.c.0.s8 %v2564_v55 }
 0x140   : > { %v632_v56 = vmax.f32 %v622_v28, %v630_v61  ;;  %v633_v22 = vmax.f32 %v623_v15, %v631_v4  ;;  %v753_v30 = vadd.f32 %v751_v58, %v2733_v20  ;;  %v754_v31 = vadd.f32 %v751_v58, %v2737_v39 }
 0x141   : > { %1508 = vperm.xlu1 %1898, %v2312_v16   ;;  %v889_v7 = vpop.permute.xlu1 %888  ;;  %v2867_v57 = vsub.s32 %v3206_v41, %v2459_v53  ;;  %v980_v41 = vadd.f32 %v2621_v52, %v2635_v17 }
 0x142   : > { %v636_v2 = vsel %vm543_vm14, %v632_v56, 0.0  ;;  %v637_v37 = vsel %vm543_vm14, %v633_v22, 0.0  ;;  %v755_v62 = vmax.f32 %v745_v8, %v753_v30  ;;  %v756_v5 = vmax.f32 %v746_v50, %v754_v31 }
 0x143   : > { %v638_v1 = vrot.slane %v636_v2, 4  ;;  %v644_v51 = vrot.slane %v637_v37, 4  ;;  %v879_v3 = vpop.permute.xlu0 %878  ;;  %v891_v26 = vadd.f32 %v889_v7, %v2817_v63  ;;  %v892_v29 = vadd.f32 %v889_v7, %v2821_v13 }
 0x144   : > { %v765_v60 = vmax.f32 %v755_v62, %v763_v47  ;;  %v766_v21 = vmax.f32 %v756_v5, %v764_v34  ;;  %v881_v42 = vadd.f32 %v879_v3, %v2733_v20  ;;  %v882_v38 = vadd.f32 %v879_v3, %v2737_v39  ;;  %v3207_v34 = vld [vmem:[#allocation13_spill] sm:$0xff] }
 0x145   : > { %v639_v9 = vadd.f32 %v638_v1, %v636_v2  ;;  %v645_v40 = vadd.f32 %v644_v51, %v637_v37  ;;  %1901 = vset.pattern.permute.xlu1 %v3205_v45  ;;  %v949_v35 = vadd.f32 %v3207_v34, %v2639_v59  ;;  %v950_v43 = vadd.f32 %v3207_v34, %v2643_v23 }
 0x146   : > { %v767_v49 = vsel %vm543_vm14, %v765_v60, 0.0  ;;  %v768_v11 = vsel %vm543_vm14, %v766_v21, 0.0  ;;  %v883_v46 = vmax.f32 %v873_v44, %v881_v42  ;;  %v884_v61 = vmax.f32 %v874_v27, %v882_v38  ;;  %1262 = vperm.xlu1 %1901, %v2301_v12   ;;  %v939_v4 = vpop.permute.xlu1 %938 }
 0x147   : > { %v640_v28 = vrot.slane %v639_v9, 2  ;;  %v646_v15 = vrot.slane %v645_v40, 2  ;;  %v769_v8 = vrot.slane %v767_v49, 4  ;;  %v775_v50 = vrot.slane %v768_v11, 4 }
 0x148   : > { %v893_v58 = vmax.f32 %v883_v46, %v891_v26  ;;  %v894_v56 = vmax.f32 %v884_v61, %v892_v29  ;;  %v941_v27 = vadd.f32 %v939_v4, %v2625_v24  ;;  %v942_v3 = vadd.f32 %v939_v4, %v2629_v25 }
 0x149   : > { %v641_v22 = vadd.f32 %v640_v28, %v639_v9  ;;  %v647_v30 = vadd.f32 %v646_v15, %v645_v40  ;;  %v770_v31 = vadd.f32 %v769_v8, %v767_v49  ;;  %v776_v47 = vadd.f32 %v775_v50, %v768_v11 }
 0x14a   : > { %v895_v7 = vsel %vm543_vm14, %v893_v58, 0.0  ;;  %v896_v55 = vsel %vm543_vm14, %v894_v56, 0.0  ;;  %1518 = vperm.xlu1 %1901, %v2312_v16   ;;  %v3208_v45 = vmov 8   ;;  %v979_v49 = vadd.f32 %v2621_v52, %v2632_v19 }
 0x14b   : > { %v642_v2 = vrot.slane %v641_v22, 1  ;;  %v648_v37 = vrot.slane %v647_v30, 1  ;;  %v771_v62 = vrot.slane %v770_v31, 2  ;;  %v777_v5 = vrot.slane %v776_v47, 2  ;;  %v957_v1 = vpop.permute.xlu1 %956 }
 0x14c   : > { %v897_v51 = vrot.slane %v895_v7, 4  ;;  %v903_v44 = vrot.slane %v896_v55, 4  ;;  %v959_v26 = vadd.f32 %v957_v1, %v2647_v0  ;;  %v960_v29 = vadd.f32 %v957_v1, %v2651_v6 }
 0x14d   : > { %v643_v60 = vadd.f32 %v642_v2, %v641_v22  ;;  %v649_v21 = vadd.f32 %v648_v37, %v647_v30  ;;  %v772_v42 = vadd.f32 %v771_v62, %v770_v31  ;;  %v778_v38 = vadd.f32 %v777_v5, %v776_v47  ;;  %v650_v30 = vld [vmem:[%s2447_s30] ss:$8 sm:$0x3] }
 0x14e   : > { %v898_v9 = vadd.f32 %v897_v51, %v895_v7  ;;  %v904_v40 = vadd.f32 %v903_v44, %v896_v55  ;;  %1902 = vset.pattern.permute.xlu1 %v3208_v45  ;;  %v951_v15 = vmax.f32 %v941_v27, %v949_v35  ;;  %v952_v8 = vmax.f32 %v942_v3, %v950_v43  ;;  %v1730_v3 = vld [vmem:[%s2447_s30 + $0x1] ss:$8 sm:$0x3] }
 0x14f   : > { %v653_v11 = vcombine.low %v643_v60, %v649_v21  ;;  %v773_v46 = vrot.slane %v772_v42, 1  ;;  %v779_v61 = vrot.slane %v778_v38, 1  ;;  %1272 = vperm.xlu1 %1902, %v2301_v12   ;;  %v3209_v52 = vlaneseq }
 0x150   : > { %v899_v4 = vrot.slane %v898_v9, 2  ;;  %v905_v28 = vrot.slane %v904_v40, 2  ;;  %v967_v50 = vpop.permute.xlu1 %966  ;;  %v961_v34 = vmax.f32 %v951_v15, %v959_v26  ;;  %v962_v7 = vmax.f32 %v952_v8, %v960_v29 }
 0x151   : > { %v660_v58 = vrot.slane %v653_v11, %v2867_v57  ;;  %v774_v56 = vadd.f32 %v773_v46, %v772_v42  ;;  %v780_v22 = vadd.f32 %v779_v61, %v778_v38  ;;  %v969_v35 = vadd.f32 %v967_v50, %v2698_v48  ;;  %v1007_v11 = vpop.permute.xlu0 %1006  ;;  %v1732_v61 = vld [vmem:[%s2447_s30 + $0x2] ss:$8 sm:$0x3] }
 0x152   : > { %v900_v31 = vadd.f32 %v899_v4, %v898_v9  ;;  %v906_v47 = vadd.f32 %v905_v28, %v904_v40  ;;  %v970_v43 = vadd.f32 %v967_v50, %v2702_v32  ;;  %vm2895_vm7 = vcmp.lt.s32.totalorder %v3209_v52, 256 }
 0x153   : > { %v667_v12 = vrot.slane %v660_v58, %v2867_v57  ;;  %v785_v55 = vcombine.low %v774_v56, %v780_v22  ;;  %1528 = vperm.xlu1 %1902, %v2312_v16   ;;  %v971_v51 = vmax.f32 %v961_v34, %v969_v35  ;;  %v1009_v50 = vadd.f32 %v1007_v11, %v2733_v20 }
 0x154   : > { %v901_v37 = vrot.slane %v900_v31, 1  ;;  %v907_v62 = vrot.slane %v906_v47, 1  ;;  %v972_v44 = vmax.f32 %v962_v7, %v970_v43 }
 0x155   : > { %v669_v5 = vadd.f32 %v667_v12, %v650_v30  ;;  %v792_v1 = vrot.slane %v785_v55, %v2867_v57  ;;  %v987_v27 = vpop.permute.xlu1 %986  ;;  %v981_v42 = vmax.f32 %v971_v51, %v979_v49 }
 0x156   : > { %v902_v60 = vadd.f32 %v901_v37, %v900_v31  ;;  %v908_v21 = vadd.f32 %v907_v62, %v906_v47  ;;  %v982_v38 = vmax.f32 %v972_v44, %v980_v41  ;;  %v989_v9 = vadd.f32 %v987_v27, %v2706_v33 }
 0x157   : > { %674 = vst.msk [vmem:[%s2447_s30] ss:$8 sm:$0x3] %vm2895_vm7, %v669_v5  ;;  %v799_v16 = vrot.slane %v792_v1, %v2867_v57  ;;  %v990_v26 = vadd.f32 %v987_v27, %v2710_v36  ;;  %v1010_v41 = vadd.f32 %v1007_v11, %v2737_v39 }
 0x158   : > { %v913_v40 = vcombine.low %v902_v60, %v908_v21  ;;  %v991_v4 = vmax.f32 %v981_v42, %v989_v9  ;;  %v3212_v21 = vld [vmem:[#allocation14_spill] sm:$0xff] }
 0x159   : > { %v801_v29 = vadd.f32 %v1730_v3, %v799_v16  ;;  %v992_v28 = vmax.f32 %v982_v38, %v990_v26  ;;  %v1077_v16 = vadd.f32 %v3212_v21, %v2639_v59  ;;  %v1078_v42 = vadd.f32 %v3212_v21, %v2643_v23 }
 0x15a   : > { %v920_v45 = vrot.slane %v913_v40, %v2867_v57  ;;  %v997_v46 = vpop.permute.xlu1 %996 }
 0x15b   : > { %1731 = vst.msk [vmem:[%s2447_s30 + $0x1] ss:$8 sm:$0x3] %vm2895_vm7, %v801_v29  ;;  %v999_v49 = vadd.f32 %v997_v46, %v2725_v14  ;;  %v1000_v15 = vadd.f32 %v997_v46, %v2729_v18 }
 0x15c   : > { %v927_v8 = vrot.slane %v920_v45, %v2867_v57 }
 0x15d   : > { %v1001_v58 = vmax.f32 %v991_v4, %v999_v49  ;;  %v1002_v56 = vmax.f32 %v992_v28, %v1000_v15  ;;  %v1108_v4 = vadd.f32 %v2686_v54, %v2635_v17 }
 0x15e   : > { %v929_v22 = vadd.f32 %v1732_v61, %v927_v8  ;;  %v1107_v61 = vadd.f32 %v2686_v54, %v2632_v19 }
 0x15f   : > { %v1017_v30 = vpop.permute.xlu1 %1016  ;;  %v1011_v31 = vmax.f32 %v1001_v58, %v1009_v50  ;;  %v1012_v47 = vmax.f32 %v1002_v56, %v1010_v41 }
 0x160   : > { %1733 = vst.msk [vmem:[%s2447_s30 + $0x2] ss:$8 sm:$0x3] %vm2895_vm7, %v929_v22  ;;  %v1019_v34 = vadd.f32 %v1017_v30, %v2817_v63  ;;  %v1020_v7 = vadd.f32 %v1017_v30, %v2821_v13 }
 0x162   : > { %v1021_v12 = vmax.f32 %v1011_v31, %v1019_v34  ;;  %v1022_v55 = vmax.f32 %v1012_v47, %v1020_v7 }
 0x164   : > { %v1023_v35 = vsel %vm543_vm14, %v1021_v12, 0.0  ;;  %v1024_v43 = vsel %vm543_vm14, %v1022_v55, 0.0  ;;  %v1067_v52 = vpop.permute.xlu1 %1066  ;;  %v1734_v12 = vld [vmem:[%s2447_s30 + $0x3] ss:$8 sm:$0x3] }
 0x165   : > { %v1025_v37 = vrot.slane %v1023_v35, 4  ;;  %v1031_v62 = vrot.slane %v1024_v43, 4  ;;  %v1069_v51 = vadd.f32 %v1067_v52, %v2625_v24  ;;  %v1070_v44 = vadd.f32 %v1067_v52, %v2629_v25  ;;  %v1135_v52 = vpop.permute.xlu0 %1134 }
 0x167   : > { %v1026_v5 = vadd.f32 %v1025_v37, %v1023_v35  ;;  %v1032_v1 = vadd.f32 %v1031_v62, %v1024_v43  ;;  %v1079_v29 = vmax.f32 %v1069_v51, %v1077_v16  ;;  %v1080_v45 = vmax.f32 %v1070_v44, %v1078_v42 }
 0x168   : > { %v1137_v44 = vadd.f32 %v1135_v52, %v2733_v20 }
 0x169   : > { %v1027_v27 = vrot.slane %v1026_v5, 2  ;;  %v1033_v3 = vrot.slane %v1032_v1, 2  ;;  %v1085_v60 = vpop.permute.xlu1 %1084 }
 0x16a   : > { %v1087_v38 = vadd.f32 %v1085_v60, %v2647_v0  ;;  %v1088_v9 = vadd.f32 %v1085_v60, %v2651_v6 }
 0x16b   : > { %v1028_v40 = vadd.f32 %v1027_v27, %v1026_v5  ;;  %v1034_v26 = vadd.f32 %v1033_v3, %v1032_v1  ;;  %v1138_v27 = vadd.f32 %v1135_v52, %v2737_v39 }
 0x16c   : > { %v1089_v28 = vmax.f32 %v1079_v29, %v1087_v38  ;;  %v1090_v49 = vmax.f32 %v1080_v45, %v1088_v9 }
 0x16d   : > { %v1029_v11 = vrot.slane %v1028_v40, 1  ;;  %v1035_v46 = vrot.slane %v1034_v26, 1 }
 0x16e   : > { %v1095_v15 = vpop.permute.xlu1 %1094 }
 0x16f   : > { %v1030_v8 = vadd.f32 %v1029_v11, %v1028_v40  ;;  %v1036_v50 = vadd.f32 %v1035_v46, %v1034_v26  ;;  %v1097_v41 = vadd.f32 %v1095_v15, %v2698_v48  ;;  %v1098_v58 = vadd.f32 %v1095_v15, %v2702_v32 }
 0x171   : > { %v1041_v56 = vcombine.low %v1030_v8, %v1036_v50  ;;  %v1099_v22 = vmax.f32 %v1089_v28, %v1097_v41  ;;  %v1100_v30 = vmax.f32 %v1090_v49, %v1098_v58 }
 0x173   : > { %v1048_v31 = vrot.slane %v1041_v56, %v2867_v57  ;;  %v1115_v47 = vpop.permute.xlu1 %1114  ;;  %v1109_v34 = vmax.f32 %v1099_v22, %v1107_v61  ;;  %v1110_v7 = vmax.f32 %v1100_v30, %v1108_v4 }
 0x174   : > { %v1117_v55 = vadd.f32 %v1115_v47, %v2706_v33  ;;  %v1118_v35 = vadd.f32 %v1115_v47, %v2710_v36 }
 0x175   : > { %v1055_v54 = vrot.slane %v1048_v31, %v2867_v57 }
 0x176   : > { %v1119_v62 = vmax.f32 %v1109_v34, %v1117_v55  ;;  %v1120_v5 = vmax.f32 %v1110_v7, %v1118_v35 }
 0x177   : > { %v1057_v43 = vadd.f32 %v1734_v12, %v1055_v54  ;;  %v3213_v54 = vld [vmem:[#allocation18_spill] sm:$0xff] }
 0x178   : > { %v1125_v37 = vpop.permute.xlu1 %1124  ;;  %v1343_v55 = vadd.f32 %v3213_v54, %v2647_v0  ;;  %v1344_v35 = vadd.f32 %v3213_v54, %v2651_v6 }
 0x179   : > { %1735 = vst.msk [vmem:[%s2447_s30 + $0x3] ss:$8 sm:$0x3] %vm2895_vm7, %v1057_v43  ;;  %v1127_v1 = vadd.f32 %v1125_v37, %v2725_v14  ;;  %v1128_v51 = vadd.f32 %v1125_v37, %v2729_v18  ;;  %v3214_v37 = vld [vmem:[#allocation19_spill] sm:$0xff] }
 0x17b   : > { %v1129_v3 = vmax.f32 %v1119_v62, %v1127_v1  ;;  %v1130_v60 = vmax.f32 %v1120_v5, %v1128_v51  ;;  %v1353_v62 = vadd.f32 %v3214_v37, %v2698_v48  ;;  %v1354_v5 = vadd.f32 %v3214_v37, %v2702_v32 }
 0x17d   : > { %v1145_v21 = vpop.permute.xlu1 %1144  ;;  %v1139_v16 = vmax.f32 %v1129_v3, %v1137_v44  ;;  %v1140_v42 = vmax.f32 %v1130_v60, %v1138_v27  ;;  %v3215_v44 = vld [vmem:[#allocation20_spill] sm:$0xff] }
 0x17e   : > { %v1147_v38 = vadd.f32 %v1145_v21, %v2817_v63  ;;  %v1148_v9 = vadd.f32 %v1145_v21, %v2821_v13  ;;  %v1363_v27 = vadd.f32 %v3215_v44, %v2632_v19  ;;  %v1364_v3 = vadd.f32 %v3215_v44, %v2635_v17 }
 0x180   : > { %v1149_v40 = vmax.f32 %v1139_v16, %v1147_v38  ;;  %v1150_v26 = vmax.f32 %v1140_v42, %v1148_v9  ;;  %v1391_v16 = vpop.permute.xlu0 %1390 }
 0x182   : > { %v1151_v29 = vsel %vm543_vm14, %v1149_v40, 0.0  ;;  %v1152_v45 = vsel %vm543_vm14, %v1150_v26, 0.0  ;;  %v2958_v11 = vpop.permute.xlu1 %1194  ;;  %v3216_v26 = vld [vmem:[#allocation21_spill] sm:$0xff] }
 0x183   : > { %v1153_v46 = vrot.slane %v1151_v29, 4  ;;  %v1159_v61 = vrot.slane %v1152_v45, 4 }
 0x185   : > { %v1154_v4 = vadd.f32 %v1153_v46, %v1151_v29  ;;  %v1160_v28 = vadd.f32 %v1159_v61, %v1152_v45  ;;  %v1373_v29 = vadd.f32 %v3216_v26, %v2706_v33  ;;  %v1374_v45 = vadd.f32 %v3216_v26, %v2710_v36  ;;  %v1736_v46 = vld [vmem:[%s2447_s30 + $0x4] ss:$8 sm:$0x3] }
 0x186   : > { %v1323_v49 = vpop.permute.xlu1 %1322 }
 0x187   : > { %v1155_v15 = vrot.slane %v1154_v4, 2  ;;  %v1161_v8 = vrot.slane %v1160_v28, 2  ;;  %v1325_v30 = vadd.f32 %v1323_v49, %v2625_v24  ;;  %v1326_v31 = vadd.f32 %v1323_v49, %v2629_v25 }
 0x189   : > { %v1156_v50 = vadd.f32 %v1155_v15, %v1154_v4  ;;  %v1162_v41 = vadd.f32 %v1161_v8, %v1160_v28  ;;  %v1383_v15 = vadd.f32 %v2803_v10, %v2725_v14  ;;  %v1384_v8 = vadd.f32 %v2803_v10, %v2729_v18 }
 0x18b   : > { %v1157_v58 = vrot.slane %v1156_v50, 1  ;;  %v1163_v56 = vrot.slane %v1162_v41, 1  ;;  %v1331_v22 = vpop.permute.xlu1 %1330 }
 0x18c   : > { %v1333_v47 = vadd.f32 %v1331_v22, %v2639_v59  ;;  %v1334_v34 = vadd.f32 %v1331_v22, %v2643_v23  ;;  %v1394_v22 = vadd.f32 %v1391_v16, %v2737_v39 }
 0x18d   : > { %v1158_v7 = vadd.f32 %v1157_v58, %v1156_v50  ;;  %v1164_v12 = vadd.f32 %v1163_v56, %v1162_v41  ;;  %v1401_v58 = vpop.permute.xlu0 %1400  ;;  %v1393_v56 = vadd.f32 %v1391_v16, %v2733_v20 }
 0x18e   : > { %v1335_v43 = vmax.f32 %v1325_v30, %v1333_v47  ;;  %v1336_v52 = vmax.f32 %v1326_v31, %v1334_v34  ;;  %v1403_v34 = vadd.f32 %v1401_v58, %v2817_v63 }
 0x18f   : > { %v1169_v1 = vcombine.low %v1158_v7, %v1164_v12  ;;  %v2972_v51 = vpop.permute.xlu1 %1458  ;;  %v1404_v7 = vadd.f32 %v1401_v58, %v2821_v13 }
 0x190   : > { %v1345_v60 = vmax.f32 %v1335_v43, %v1343_v55  ;;  %v1346_v21 = vmax.f32 %v1336_v52, %v1344_v35 }
 0x191   : > { %v1176_v42 = vrot.slane %v1169_v1, %v2867_v57 }
 0x192   : > { %v1355_v38 = vmax.f32 %v1345_v60, %v1353_v62  ;;  %v1356_v9 = vmax.f32 %v1346_v21, %v1354_v5 }
 0x193   : > { %v1183_v40 = vrot.slane %v1176_v42, %v2867_v57 }
 0x194   : > { %v1365_v61 = vmax.f32 %v1355_v38, %v1363_v27  ;;  %v1366_v4 = vmax.f32 %v1356_v9, %v1364_v3  ;;  %v1213_v28 = vpop.permute.xlu1 %1212 }
 0x195   : > { %v1185_v49 = vadd.f32 %v1736_v46, %v1183_v40 }
 0x196   : > { %v1375_v50 = vmax.f32 %v1365_v61, %v1373_v29  ;;  %v1376_v41 = vmax.f32 %v1366_v4, %v1374_v45  ;;  %v1740_v4 = vld [vmem:[%s2447_s30 + $0x6] ss:$8 sm:$0x3] }
 0x197   : > { %1737 = vst.msk [vmem:[%s2447_s30 + $0x4] ss:$8 sm:$0x3] %vm2895_vm7, %v1185_v49 }
 0x198   : > { %v1385_v30 = vmax.f32 %v1375_v50, %v1383_v15  ;;  %v1386_v31 = vmax.f32 %v1376_v41, %v1384_v8  ;;  %v1469_v47 = vpop.permute.xlu1 %1468  ;;  %v1197_v50 = vadd.f32 %v2958_v11, %v2625_v24  ;;  %v1198_v41 = vadd.f32 %v2958_v11, %v2629_v25 }
 0x19a   : > { %v1395_v12 = vmax.f32 %v1385_v30, %v1393_v56  ;;  %v1396_v54 = vmax.f32 %v1386_v31, %v1394_v22  ;;  %v3217_v56 = vld [vmem:[#allocation15_spill] sm:$0xff]  ;;  %v1215_v31 = vadd.f32 %v1213_v28, %v2647_v0 }
 0x19b   : > { %v1205_v22 = vadd.f32 %v3217_v56, %v2639_v59  ;;  %v1206_v30 = vadd.f32 %v3217_v56, %v2643_v23 }
 0x19c   : > { %v1405_v10 = vmax.f32 %v1395_v12, %v1403_v34  ;;  %v1406_v55 = vmax.f32 %v1396_v54, %v1404_v7  ;;  %v1216_v34 = vadd.f32 %v1213_v28, %v2651_v6  ;;  %v1461_v7 = vadd.f32 %v2972_v51, %v2639_v59 }
 0x19d   : > { %v1223_v35 = vpop.permute.xlu1 %1222  ;;  %v1462_v12 = vadd.f32 %v2972_v51, %v2643_v23  ;;  %v1207_v54 = vmax.f32 %v1197_v50, %v1205_v22  ;;  %v1471_v28 = vadd.f32 %v1469_v47, %v2647_v0 }
 0x19e   : > { %v1407_v43 = vsel %vm543_vm14, %v1405_v10, 0.0  ;;  %v1408_v52 = vsel %vm543_vm14, %v1406_v55, 0.0  ;;  %v1208_v10 = vmax.f32 %v1198_v41, %v1206_v30  ;;  %v1225_v11 = vadd.f32 %v1223_v35, %v2698_v48 }
 0x19f   : > { %v1409_v37 = vrot.slane %v1407_v43, 4  ;;  %v1415_v62 = vrot.slane %v1408_v52, 4  ;;  %v1226_v55 = vadd.f32 %v1223_v35, %v2702_v32  ;;  %v1217_v59 = vmax.f32 %v1207_v54, %v1215_v31 }
 0x1a1   : > { %v1410_v5 = vadd.f32 %v1409_v37, %v1407_v43  ;;  %v1416_v1 = vadd.f32 %v1415_v62, %v1408_v52  ;;  %v1479_v44 = vpop.permute.xlu1 %1478  ;;  %v3218_v43 = vld [vmem:[#allocation17_spill] sm:$0xff]  ;;  %v1472_v62 = vadd.f32 %v1469_v47, %v2651_v6 }
 0x1a2   : > { %v1453_v52 = vadd.f32 %v3218_v43, %v2625_v24  ;;  %v1454_v37 = vadd.f32 %v3218_v43, %v2629_v25  ;;  %v1481_v35 = vadd.f32 %v1479_v44, %v2698_v48  ;;  %v1482_v24 = vadd.f32 %v1479_v44, %v2702_v32 }
 0x1a3   : > { %v1411_v27 = vrot.slane %v1410_v5, 2  ;;  %v1417_v3 = vrot.slane %v1416_v1, 2 }
 0x1a5   : > { %v1412_v60 = vadd.f32 %v1411_v27, %v1410_v5  ;;  %v1418_v21 = vadd.f32 %v1417_v3, %v1416_v1  ;;  %v1218_v5 = vmax.f32 %v1208_v10, %v1216_v34  ;;  %v1463_v27 = vmax.f32 %v1453_v52, %v1461_v7 }
 0x1a6   : > { %v1233_v16 = vpop.permute.xlu1 %1232  ;;  %v1464_v3 = vmax.f32 %v1454_v37, %v1462_v12 }
 0x1a7   : > { %v1413_v42 = vrot.slane %v1412_v60, 1  ;;  %v1419_v38 = vrot.slane %v1418_v21, 1  ;;  %v1235_v23 = vadd.f32 %v1233_v16, %v2632_v19  ;;  %v1236_v51 = vadd.f32 %v1233_v16, %v2635_v17 }
 0x1a8   : > { %v1473_v6 = vmax.f32 %v1463_v27, %v1471_v28  ;;  %v1474_v47 = vmax.f32 %v1464_v3, %v1472_v62 }
 0x1a9   : > { %v1414_v9 = vadd.f32 %v1413_v42, %v1412_v60  ;;  %v1420_v40 = vadd.f32 %v1419_v38, %v1418_v21  ;;  %v1227_v60 = vmax.f32 %v1217_v59, %v1225_v11  ;;  %v1228_v21 = vmax.f32 %v1218_v5, %v1226_v55 }
 0x1aa   : > { %v1489_v26 = vpop.permute.xlu1 %1488  ;;  %v1483_v32 = vmax.f32 %v1473_v6, %v1481_v35  ;;  %v1484_v44 = vmax.f32 %v1474_v47, %v1482_v24 }
 0x1ab   : > { %v1425_v29 = vcombine.low %v1414_v9, %v1420_v40  ;;  %v1491_v42 = vadd.f32 %v1489_v26, %v2632_v19  ;;  %v1492_v38 = vadd.f32 %v1489_v26, %v2635_v17  ;;  %v1237_v16 = vmax.f32 %v1227_v60, %v1235_v23 }
 0x1ac   : > { %v1238_v9 = vmax.f32 %v1228_v21, %v1236_v51 }
 0x1ad   : > { %v1432_v45 = vrot.slane %v1425_v29, %v2867_v57  ;;  %v1493_v17 = vmax.f32 %v1483_v32, %v1491_v42  ;;  %v1494_v26 = vmax.f32 %v1484_v44, %v1492_v38 }
 0x1af   : > { %v1439_v46 = vrot.slane %v1432_v45, %v2867_v57  ;;  %v1243_v61 = vpop.permute.xlu1 %1242 }
 0x1b0   : > { %v1245_v25 = vadd.f32 %v1243_v61, %v2706_v33  ;;  %v1246_v0 = vadd.f32 %v1243_v61, %v2710_v36 }
 0x1b1   : > { %v1441_v49 = vadd.f32 %v1740_v4, %v1439_v46 }
 0x1b2   : > { %v1247_v61 = vmax.f32 %v1237_v16, %v1245_v25  ;;  %v1248_v4 = vmax.f32 %v1238_v9, %v1246_v0 }
 0x1b3   : > { %1741 = vst.msk [vmem:[%s2447_s30 + $0x6] ss:$8 sm:$0x3] %vm2895_vm7, %v1441_v49  ;;  %v1499_v15 = vpop.permute.xlu1 %1498 }
 0x1b4   : > { %v1501_v45 = vadd.f32 %v1499_v15, %v2706_v33  ;;  %v1502_v46 = vadd.f32 %v1499_v15, %v2710_v36 }
 0x1b6   : > { %v1503_v22 = vmax.f32 %v1493_v17, %v1501_v45  ;;  %v1504_v30 = vmax.f32 %v1494_v26, %v1502_v46  ;;  %v1742_v17 = vld [vmem:[%s2447_s30 + $0x7] ss:$8 sm:$0x3] }
 0x1b8   : > { %v1253_v8 = vpop.permute.xlu1 %1252 }
 0x1b9   : > { %v1255_v40 = vadd.f32 %v1253_v8, %v2725_v14  ;;  %v1256_v48 = vadd.f32 %v1253_v8, %v2729_v18 }
 0x1bb   : > { %v1257_v8 = vmax.f32 %v1247_v61, %v1255_v40  ;;  %v1258_v56 = vmax.f32 %v1248_v4, %v1256_v48  ;;  %v1738_v61 = vld [vmem:[%s2447_s30 + $0x5] ss:$8 sm:$0x3] }
 0x1bc   : > { %v1509_v58 = vpop.permute.xlu1 %1508 }
 0x1bd   : > { %v1511_v50 = vadd.f32 %v1509_v58, %v2725_v14  ;;  %v1512_v41 = vadd.f32 %v1509_v58, %v2729_v18 }
 0x1bf   : > { %v1513_v54 = vmax.f32 %v1503_v22, %v1511_v50  ;;  %v1514_v10 = vmax.f32 %v1504_v30, %v1512_v41 }
 0x1c1   : > { %v1263_v1 = vpop.permute.xlu1 %1262 }
 0x1c2   : > { %v1265_v49 = vadd.f32 %v1263_v1, %v2733_v20  ;;  %v1266_v19 = vadd.f32 %v1263_v1, %v2737_v39 }
 0x1c4   : > { %v1267_v31 = vmax.f32 %v1257_v8, %v1265_v49  ;;  %v1268_v34 = vmax.f32 %v1258_v56, %v1266_v19 }
 0x1c5   : > { %v1519_v29 = vpop.permute.xlu1 %1518 }
 0x1c6   : > { %v1521_v33 = vadd.f32 %v1519_v29, %v2733_v20  ;;  %v1522_v36 = vadd.f32 %v1519_v29, %v2737_v39 }
 0x1c8   : > { %v1523_v18 = vmax.f32 %v1513_v54, %v1521_v33  ;;  %v1524_v58 = vmax.f32 %v1514_v10, %v1522_v36 }
 0x1ca   : > { %v1273_v15 = vpop.permute.xlu1 %1272 }
 0x1cb   : > { %v1275_v7 = vadd.f32 %v1273_v15, %v2817_v63  ;;  %v1276_v12 = vadd.f32 %v1273_v15, %v2821_v13 }
 0x1cd   : > { %v1277_v14 = vmax.f32 %v1267_v31, %v1275_v7  ;;  %v1278_v11 = vmax.f32 %v1268_v34, %v1276_v12 }
 0x1ce   : > { %v1529_v55 = vpop.permute.xlu1 %1528 }
 0x1cf   : > { %v1279_v43 = vsel %vm543_vm14, %v1277_v14, 0.0  ;;  %v1280_v20 = vsel %vm543_vm14, %v1278_v11, 0.0  ;;  %v1531_v39 = vadd.f32 %v1529_v55, %v2817_v63  ;;  %v1532_v52 = vadd.f32 %v1529_v55, %v2821_v13 }
 0x1d0   : > { %v1281_v37 = vrot.slane %v1279_v43, 4  ;;  %v1287_v28 = vrot.slane %v1280_v20, 4 }
 0x1d1   : > { %v1533_v62 = vmax.f32 %v1523_v18, %v1531_v39  ;;  %v1534_v59 = vmax.f32 %v1524_v58, %v1532_v52 }
 0x1d2   : > { %v1282_v5 = vadd.f32 %v1281_v37, %v1279_v43  ;;  %v1288_v23 = vadd.f32 %v1287_v28, %v1280_v20 }
 0x1d3   : > { %v1535_v51 = vsel %vm543_vm14, %v1533_v62, 0.0  ;;  %v1536_v1 = vsel %vm543_vm14, %v1534_v59, 0.0 }
 0x1d4   : > { %v1283_v27 = vrot.slane %v1282_v5, 2  ;;  %v1289_v3 = vrot.slane %v1288_v23, 2  ;;  %v1537_v35 = vrot.slane %v1535_v51, 4  ;;  %v1543_v24 = vrot.slane %v1536_v1, 4 }
 0x1d6   : > { %v1284_v60 = vadd.f32 %v1283_v27, %v1282_v5  ;;  %v1290_v63 = vadd.f32 %v1289_v3, %v1288_v23  ;;  %v1538_v21 = vadd.f32 %v1537_v35, %v1535_v51  ;;  %v1544_v13 = vadd.f32 %v1543_v24, %v1536_v1 }
 0x1d8   : > { %v1285_v25 = vrot.slane %v1284_v60, 1  ;;  %v1291_v0 = vrot.slane %v1290_v63, 1  ;;  %v1539_v6 = vrot.slane %v1538_v21, 2  ;;  %v1545_v47 = vrot.slane %v1544_v13, 2 }
 0x1da   : > { %v1286_v42 = vadd.f32 %v1285_v25, %v1284_v60  ;;  %v1292_v38 = vadd.f32 %v1291_v0, %v1290_v63  ;;  %v1540_v53 = vadd.f32 %v1539_v6, %v1538_v21  ;;  %v1546_v16 = vadd.f32 %v1545_v47, %v1544_v13 }
 0x1dc   : > { %v1297_v9 = vcombine.low %v1286_v42, %v1292_v38  ;;  %v1541_v40 = vrot.slane %v1540_v53, 1  ;;  %v1547_v48 = vrot.slane %v1546_v16, 1 }
 0x1de   : > { %v1304_v29 = vrot.slane %v1297_v9, %v2867_v57  ;;  %v1542_v32 = vadd.f32 %v1541_v40, %v1540_v53  ;;  %v1548_v44 = vadd.f32 %v1547_v48, %v1546_v16 }
 0x1e0   : > { %v1311_v45 = vrot.slane %v1304_v29, %v2867_v57  ;;  %v1553_v46 = vcombine.low %v1542_v32, %v1548_v44 }
 0x1e2   : > { %v1313_v4 = vadd.f32 %v1738_v61, %v1311_v45  ;;  %v1560_v49 = vrot.slane %v1553_v46, %v2867_v57 }
 0x1e4   : > { %1739 = vst.msk [vmem:[%s2447_s30 + $0x5] ss:$8 sm:$0x3] %vm2895_vm7, %v1313_v4  ;;  %v1567_v19 = vrot.slane %v1560_v49, %v2867_v57 }
 0x1e6   : > { %v1569_v26 = vadd.f32 %v1742_v17, %v1567_v19 }
 0x1e8   : > { %1743 = vst.msk [vmem:[%s2447_s30 + $0x7] ss:$8 sm:$0x3] %vm2895_vm7, %v1569_v26 }
 0x1e9   : > { %1997 = shalt.err (!%p1994_p5)
}
 0x1ea   : > { %s1998_s14 = scalar_lea.hbm %s1587_s27, 256  ;;  %s2002_s21 = scalar_lea.hbm %s3115_s4, 512 }
 0x1eb   : > { %p1999_p10 = scmp.ne.s32.totalorder %s1587_s27, %s1998_s14  ;;  %p2003_p6 = scmp.lt.s32.totalorder %s1587_s27, %s3115_s4 }
 0x1ec   : > { %p2004_p12 = scmp.lt.s32.totalorder %s2002_s21, %s1998_s14 }
 0x1ed   : > { %p2000_p1 = pnand %p1999_p10, %p2216_p7 }
 0x1ee   : > { %p2005_p3 = por %p2004_p12, %p2003_p6 }
 0x1ef   : > { %p2001_p4 = pneg %p2000_p1 }
 0x1f1   : > { %p2006_p8 = pnand %p2005_p3, %p2001_p4 }
 0x1f3   : > { %2009 = shalt.err (!%p2006_p8)
}
 0x1f4   : > { %1761 = dma.vmem_to_hbm [thread:$0]  (%p2216_p7), %s1590_s6, 256, %s1587_s27, %s1573_s25  }
 0x1f5 PF: > { %s1601_s30 = sand.u32 1, %s2048_s15   ;;  %p3219_p9 = scmp.ne.s32.totalorder %s3138_s26, 0 }
 0x1f6   : > { %p3220_p11 = scmp.ge.s32.totalorder %s2068_s20, 2  ;;  %s1602_s8 = scalar_lea.sflag [#allocation5], %s1601_s30 }
 0x1f8   : > { %p1775_p2 = pnand %p3220_p11, %p3219_p9 }
 0x1fa   : > { %p1776_p13 = pneg %p1775_p2 }
 0x1fc   : > { %2043 = dma.done.wait (%p1776_p13), %s1602_s8, 256  }
 0x1fd   : > { %2045 = vsyncadd (%p1776_p13), %s1602_s8, 4294967040  ;;  %s21_s20 = sadd.s32 1, %s2068_s20   ;;  %s3221_s15 = smov %s2052_s16 }
 0x1fe   : > { %p18_p0 = scmp.ge.s32.totalorder %s21_s20, 4   ;;  %s3222_s16 = smov %s2056_s17 }
 0x1ff   : > { %s3223_s17 = smov %s2225_s9  ;;  %s3224_s18 = smov %s2064_s19 }
 0x200   : > { %s3225_s19 = smov %s3227_s28  ;;  %20 = sbr.rel (!%p18_p0) target bundleno = 7 (0x7), region = 127 }
 0x205   :  { %1607 = vsyncpa [#allocation4], 1 }
 0x206   :  { %1609 = vsyncpa [#allocation4 + $0x1], 1 }
 0x207   :  { %1610 = vsyncpa [#allocation7], 1 }
 0x208   :  { %1611 = vsyncpa [#allocation5], 1 }
 0x209   :  { %1613 = vsyncpa [#allocation5 + $0x1], 1 }

</bundles_post_ra>
